<compile_context>
chip_gen: v7x
topology: tpu7x:2x2x1
jax: 0.10.0
libtpu: 0.0.40
codegen_flags: <defaults>
</compile_context>

<pallas_src>
import jax
import jax.numpy as jnp
from jax import lax
from jax.experimental import pallas as pl
from jax.experimental.pallas import tpu as pltpu

NEG_SLOPE = 0.01  # torch.nn.LeakyReLU default


def _leaky_relu(x):
    return jnp.where(x > 0, x, NEG_SLOPE * x)


def _round_up(v, m):
    return ((v + m - 1) // m) * m


def style_decoder_kernel(x_ref,
                         w1_ref, b1_ref,
                         w2_ref, b2_ref,
                         w3_ref, b3_ref,
                         w4_ref, b4_ref,
                         o_ref):
    # Fused 4-layer MLP on one batch tile; matmuls on the MXU (bf16 operands,
    # f32 accumulation), activations on the VPU in f32, everything in VMEM.

    # In-kernel bf16 cast of the streamed input: no separate HLO convert pass
    # over the dominant HBM stream.
    x = x_ref[...].astype(jnp.bfloat16)

    # Layer 1
    h = jnp.dot(x, w1_ref[...],
                preferred_element_type=jnp.float32) + b1_ref[...]
    h = _leaky_relu(h)                   # Dropout(0.5): identity in eval mode

    # Layers 2/3: bf16 MXU operands (~3x fewer MXU passes than f32 matmuls);
    # accumulate/bias/LeakyReLU stay f32 on the VPU.
    h = jnp.dot(h.astype(jnp.bfloat16), w2_ref[...],
                preferred_element_type=jnp.float32) + b2_ref[...]
    h = _leaky_relu(h)

    h = jnp.dot(h.astype(jnp.bfloat16), w3_ref[...],
                preferred_element_type=jnp.float32) + b3_ref[...]
    h = _leaky_relu(h)

    # Final 16 -> 1 layer, lane-dense: (8,16) . (tile,16)^T -> (8, tile).
    # Only row 0 of w4_ref is the real weight (8-row pad avoids an M=1 MXU
    # tile); batch lands on the 128-lane axis so the store below is an
    # unmasked, lane-dense vst.
    z = lax.dot_general(w4_ref[...], h, (((1,), (1,)), ((), ())),
                        preferred_element_type=jnp.float32)
    z = z[0:1, :] + b4_ref[...]                                  # (1, tile)
    o_ref[...] = jax.nn.sigmoid(z).reshape(o_ref.shape).astype(o_ref.dtype)


def style_decoder_forward(embed, params, *, batch_tile=None):
    """embed: (B, D) float. params: dict of (w1,b1,...,w4,b4). Returns (B, 1) f32."""
    B, D = embed.shape

    # ---- kernel-side operand dtypes / layouts ------------------------------
    x = embed.astype(jnp.float32)          # native f32; bf16 cast is in-kernel
    w1 = params["w1"].astype(jnp.bfloat16)               # (D, 256)
    b1 = params["b1"].astype(jnp.float32)                # (1, 256)
    w2 = params["w2"].astype(jnp.bfloat16)               # (256, 64)
    b2 = params["b2"].astype(jnp.float32)                # (1, 64)
    w3 = params["w3"].astype(jnp.bfloat16)               # (64, 16)
    b3 = params["b3"].astype(jnp.float32)                # (1, 16)
    # Final-layer weight as a sublane-padded (8, 16) block; row 0 = w4^T.
    w4_row = params["w4"].reshape(1, 16).astype(jnp.float32)
    w4_pad = jnp.pad(w4_row, ((0, 7), (0, 0)))           # (8, 16)
    b4 = params["b4"].reshape(1, 1).astype(jnp.float32)  # (1, 1)

    # ---- per-generation VMEM budget -----------------------------------------
    try:
        vmem_cap = int(pltpu.get_tpu_info().vmem_capacity_bytes)
    except Exception:
        vmem_cap = 64 * 1024 * 1024        # v7x physical VMEM (smallest gen)
    vmem_limit = min(vmem_cap // 2, 48 * 1024 * 1024)
    budget = (2 * vmem_limit) // 3         # headroom for compiler scratch

    # ---- batch tile selection (VMEM-budgeted, >=2 even grid steps) ----------
    if batch_tile is None:
        # Resident operands (double-buffered by the pipeline machinery).
        fixed = 2 * (D * 256 * 2                       # w1 bf16
                     + (256 * 64 + 64 * 16) * 2        # w2/w3 bf16
                     + 8 * 16 * 4                      # w4 pad f32
                     + (256 + 64 + 16 + 1) * 4)        # biases f32
        # Per batch row: streamed f32 x (2 bufs) + f32 activations + bf16
        # activation copies + double-buffered f32 output.
        per_row = (2 * D * 4 + (256 + 64 + 16) * 4 + (256 + 64) * 2
                   + 2 * 4 + 8)
        cap_rows = max(128, (budget - fixed) // per_row)
        cap_rows = min(4096, (cap_rows // 128) * 128)
        if B <= 128:
            tile = B                       # tiny batch: single step
        else:
            # Smallest even (>=2) step count that respects the VMEM cap, so
            # both v7x TensorCores get balanced work.
            n_steps = pl.cdiv(_round_up(B, 128) // 128, cap_rows // 128)
            n_steps = max(2, n_steps)
            if n_steps % 2:
                n_steps += 1
            tile = _round_up(pl.cdiv(B, n_steps), 128)
    else:
        tile = int(batch_tile)
        if tile >= B:
            tile = B
        else:
            assert tile % 128 == 0, (
                "batch_tile must be a multiple of 128 when tiling: it is the "
                "lane dimension of the (1, 1, tile) output block "
                "(lane-dense unmasked stores).")

    num_tiles = pl.cdiv(B, tile)
    b_pad = num_tiles * tile
    if b_pad != B:
        x = jnp.pad(x, ((0, b_pad - B), (0, 0)))

    flops = 2 * b_pad * (D * 256 + 256 * 64 + 64 * 16 + 16)
    bytes_accessed = (b_pad * D * 4 + b_pad * 4
                      + D * 256 * 2 + (256 * 64 + 64 * 16) * 2
                      + 8 * 16 * 4 + (256 + 64 + 16 + 1) * 4)
    cost = pl.CostEstimate(flops=flops, transcendentals=b_pad,
                           bytes_accessed=bytes_accessed)

    def const_spec(shape):
        # Whole-array block with a constant block index: Pallas DMAs it once
        # and keeps it resident in VMEM across grid steps.
        # TODO(synk): pipeline_mode=pl.Buffered(1) would drop the dead second
        # buffer for these resident operands; kept at the default double
        # buffering for compile-safety across JAX versions.
        return pl.BlockSpec(shape, lambda i: (0, 0))

    out = pl.pallas_call(
        style_decoder_kernel,
        out_shape=jax.ShapeDtypeStruct((num_tiles, 1, tile), jnp.float32),
        grid_spec=pltpu.PrefetchScalarGridSpec(
            num_scalar_prefetch=0,
            grid=(num_tiles,),
            in_specs=[
                pl.BlockSpec((tile, D), lambda i: (i, 0)),   # streamed embed tile
                const_spec(w1.shape), const_spec(b1.shape),
                const_spec(w2.shape), const_spec(b2.shape),
                const_spec(w3.shape), const_spec(b3.shape),
                const_spec(w4_pad.shape), const_spec(b4.shape),
            ],
            out_specs=pl.BlockSpec((1, 1, tile), lambda i: (i, 0, 0)),
        ),
        compiler_params=pltpu.CompilerParams(
            dimension_semantics=("parallel",),
            vmem_limit_bytes=int(vmem_limit)),
        cost_estimate=cost,
    )(x, w1, b1, w2, b2, w3, b3, w4_pad, b4)

    out = out.reshape(b_pad, 1)
    return out[:B] if b_pad != B else out


def init_params(key, in_shape):
    """Deterministic init mimicking torch.nn.Linear (uniform +-1/sqrt(fan_in)).

    Weights are stored as (in_features, out_features)."""
    dims = [in_shape, 256, 64, 16, 1]
    params = {}
    for idx, (fan_in, fan_out) in enumerate(zip(dims[:-1], dims[1:]), start=1):
        key, kw, kb = jax.random.split(key, 3)
        bound = 1.0 / jnp.sqrt(float(fan_in))
        params[f"w{idx}"] = jax.random.uniform(
            kw, (fan_in, fan_out), jnp.float32, minval=-bound, maxval=bound)
        params[f"b{idx}"] = jax.random.uniform(
            kb, (1, fan_out), jnp.float32, minval=-bound, maxval=bound)
    return params


def reference_forward(embed, params):
    """Pure-JAX reference mirroring the kernel's MXU operand dtypes
    (bf16 matmul inputs for layers 1-3, f32 accumulation/bias/activation)."""
    h = embed
    for idx in (1, 2, 3):
        h = jnp.dot(h.astype(jnp.bfloat16),
                    params[f"w{idx}"].astype(jnp.bfloat16),
                    preferred_element_type=jnp.float32) + params[f"b{idx}"]
        h = _leaky_relu(h)
    h = h @ params["w4"] + params["b4"]
    return jax.nn.sigmoid(h)


if __name__ == "__main__":
    key = jax.random.PRNGKey(0)
    in_shape = 256   # "embed" feature dimension
    batch = 512      # auto tile=256 -> 2-step parallel grid (both v7x TCs busy)

    kp, kx = jax.random.split(key)
    params = init_params(kp, in_shape)
    embed = jax.random.normal(kx, (batch, in_shape), jnp.float32)

    out = style_decoder_forward(embed, params)
    out = jax.block_until_ready(out)

    ref = reference_forward(embed, params)
    assert out.shape == (batch, 1), out.shape
    assert jnp.allclose(out, ref, atol=2e-3, rtol=2e-3), (
        float(jnp.max(jnp.abs(out - ref))))

    print("KERNEL_OK")
</pallas_src>

<mosaic_0001>
module attributes {stable_mosaic.version = 11 : i64} {
  func.func @style_decoder_kernel(%arg0: i32, %arg1: memref<256x256xf32, #tpu.memory_space<vmem>>, %arg2: memref<256x256xbf16, #tpu.memory_space<vmem>>, %arg3: memref<1x256xf32, #tpu.memory_space<vmem>>, %arg4: memref<256x64xbf16, #tpu.memory_space<vmem>>, %arg5: memref<1x64xf32, #tpu.memory_space<vmem>>, %arg6: memref<64x16xbf16, #tpu.memory_space<vmem>>, %arg7: memref<1x16xf32, #tpu.memory_space<vmem>>, %arg8: memref<8x16xf32, #tpu.memory_space<vmem>>, %arg9: memref<1x1xf32, #tpu.memory_space<vmem>>, %arg10: memref<1x1x256xf32, #tpu.memory_space<vmem>>) attributes {dimension_semantics = [#tpu.dimension_semantics<parallel>], iteration_bounds = array<i64: 2>, scalar_prefetch = 0 : i64, scratch_operands = 0 : i64, tpu.core_type = #tpu.core_type<tc>, window_params = [{transform_indices = @transform_0, window_bounds = array<i64: 256, 256>}, {pipeline_mode = #tpu.pipeline_mode<synchronous>, transform_indices = @transform_1, window_bounds = array<i64: 256, 256>}, {pipeline_mode = #tpu.pipeline_mode<synchronous>, transform_indices = @transform_2, window_bounds = array<i64: 1, 256>}, {pipeline_mode = #tpu.pipeline_mode<synchronous>, transform_indices = @transform_3, window_bounds = array<i64: 256, 64>}, {pipeline_mode = #tpu.pipeline_mode<synchronous>, transform_indices = @transform_4, window_bounds = array<i64: 1, 64>}, {pipeline_mode = #tpu.pipeline_mode<synchronous>, transform_indices = @transform_5, window_bounds = array<i64: 64, 16>}, {pipeline_mode = #tpu.pipeline_mode<synchronous>, transform_indices = @transform_6, window_bounds = array<i64: 1, 16>}, {pipeline_mode = #tpu.pipeline_mode<synchronous>, transform_indices = @transform_7, window_bounds = array<i64: 8, 16>}, {pipeline_mode = #tpu.pipeline_mode<synchronous>, transform_indices = @transform_8, window_bounds = array<i64: 1, 1>}, {transform_indices = @transform_9, window_bounds = array<i64: 1, 1, 256>}]} {
    %c0 = arith.constant 0 : index
    %c0_0 = arith.constant 0 : index
    %0 = vector.load %arg1[%c0, %c0_0] : memref<256x256xf32, #tpu.memory_space<vmem>>, vector<256x256xf32>
    %1 = arith.truncf %0 : vector<256x256xf32> to vector<256x256xbf16>
    %c0_1 = arith.constant 0 : index
    %c0_2 = arith.constant 0 : index
    %2 = vector.load %arg2[%c0_1, %c0_2] : memref<256x256xbf16, #tpu.memory_space<vmem>>, vector<256x256xbf16>
    %cst = arith.constant dense<0.000000e+00> : vector<256x256xf32>
    %3 = tpu.matmul %1, %2, %cst {dimension_numbers = #tpu.dot_dimension_numbers<[1], [0], [0], [1], [0, 0, 1, 1], [], []>} : vector<256x256xbf16>, vector<256x256xbf16>, vector<256x256xf32> -> vector<256x256xf32>
    %c0_3 = arith.constant 0 : index
    %c0_4 = arith.constant 0 : index
    %4 = vector.load %arg3[%c0_3, %c0_4] : memref<1x256xf32, #tpu.memory_space<vmem>>, vector<1x256xf32>
    %5 = vector.broadcast %4 : vector<1x256xf32> to vector<256x256xf32>
    %6 = arith.addf %3, %5 : vector<256x256xf32>
    %cst_5 = arith.constant 0.000000e+00 : f32
    %7 = vector.broadcast %cst_5 : f32 to vector<256x256xf32>
    %8 = arith.cmpf ogt, %6, %7 : vector<256x256xf32>
    %cst_6 = arith.constant 0.00999999977 : f32
    %9 = vector.broadcast %cst_6 : f32 to vector<256x256xf32>
    %10 = arith.mulf %9, %6 : vector<256x256xf32>
    %11 = arith.select %8, %6, %10 : vector<256x256xi1>, vector<256x256xf32>
    %12 = arith.truncf %11 : vector<256x256xf32> to vector<256x256xbf16>
    %c0_7 = arith.constant 0 : index
    %c0_8 = arith.constant 0 : index
    %13 = vector.load %arg4[%c0_7, %c0_8] : memref<256x64xbf16, #tpu.memory_space<vmem>>, vector<256x64xbf16>
    %cst_9 = arith.constant dense<0.000000e+00> : vector<256x64xf32>
    %14 = tpu.matmul %12, %13, %cst_9 {dimension_numbers = #tpu.dot_dimension_numbers<[1], [0], [0], [1], [0, 0, 1, 1], [], []>} : vector<256x256xbf16>, vector<256x64xbf16>, vector<256x64xf32> -> vector<256x64xf32>
    %c0_10 = arith.constant 0 : index
    %c0_11 = arith.constant 0 : index
    %15 = vector.load %arg5[%c0_10, %c0_11] : memref<1x64xf32, #tpu.memory_space<vmem>>, vector<1x64xf32>
    %16 = vector.broadcast %15 : vector<1x64xf32> to vector<256x64xf32>
    %17 = arith.addf %14, %16 : vector<256x64xf32>
    %cst_12 = arith.constant 0.000000e+00 : f32
    %18 = vector.broadcast %cst_12 : f32 to vector<256x64xf32>
    %19 = arith.cmpf ogt, %17, %18 : vector<256x64xf32>
    %cst_13 = arith.constant 0.00999999977 : f32
    %20 = vector.broadcast %cst_13 : f32 to vector<256x64xf32>
    %21 = arith.mulf %20, %17 : vector<256x64xf32>
    %22 = arith.select %19, %17, %21 : vector<256x64xi1>, vector<256x64xf32>
    %23 = arith.truncf %22 : vector<256x64xf32> to vector<256x64xbf16>
    %c0_14 = arith.constant 0 : index
    %c0_15 = arith.constant 0 : index
    %24 = vector.load %arg6[%c0_14, %c0_15] : memref<64x16xbf16, #tpu.memory_space<vmem>>, vector<64x16xbf16>
    %cst_16 = arith.constant dense<0.000000e+00> : vector<256x16xf32>
    %25 = tpu.matmul %23, %24, %cst_16 {dimension_numbers = #tpu.dot_dimension_numbers<[1], [0], [0], [1], [0, 0, 1, 1], [], []>} : vector<256x64xbf16>, vector<64x16xbf16>, vector<256x16xf32> -> vector<256x16xf32>
    %c0_17 = arith.constant 0 : index
    %c0_18 = arith.constant 0 : index
    %26 = vector.load %arg7[%c0_17, %c0_18] : memref<1x16xf32, #tpu.memory_space<vmem>>, vector<1x16xf32>
    %27 = vector.broadcast %26 : vector<1x16xf32> to vector<256x16xf32>
    %28 = arith.addf %25, %27 : vector<256x16xf32>
    %cst_19 = arith.constant 0.000000e+00 : f32
    %29 = vector.broadcast %cst_19 : f32 to vector<256x16xf32>
    %30 = arith.cmpf ogt, %28, %29 : vector<256x16xf32>
    %cst_20 = arith.constant 0.00999999977 : f32
    %31 = vector.broadcast %cst_20 : f32 to vector<256x16xf32>
    %32 = arith.mulf %31, %28 : vector<256x16xf32>
    %33 = arith.select %30, %28, %32 : vector<256x16xi1>, vector<256x16xf32>
    %c0_21 = arith.constant 0 : index
    %c0_22 = arith.constant 0 : index
    %34 = vector.load %arg8[%c0_21, %c0_22] : memref<8x16xf32, #tpu.memory_space<vmem>>, vector<8x16xf32>
    %cst_23 = arith.constant dense<0.000000e+00> : vector<8x256xf32>
    %35 = tpu.matmul %34, %33, %cst_23 {dimension_numbers = #tpu.dot_dimension_numbers<[1], [1], [0], [0], [0, 0, 1, 0], [], []>} : vector<8x16xf32>, vector<256x16xf32>, vector<8x256xf32> -> vector<8x256xf32>
    %36 = vector.extract_strided_slice %35 {offsets = [0, 0], sizes = [1, 256], strides = [1, 1]} : vector<8x256xf32> to vector<1x256xf32>
    %c0_24 = arith.constant 0 : index
    %c0_25 = arith.constant 0 : index
    %37 = vector.load %arg9[%c0_24, %c0_25] : memref<1x1xf32, #tpu.memory_space<vmem>>, vector<1x1xf32>
    %38 = vector.broadcast %37 : vector<1x1xf32> to vector<1x256xf32>
    %39 = arith.addf %36, %38 : vector<1x256xf32>
    %40 = arith.negf %39 : vector<1x256xf32>
    %41 = math.exp %40 : vector<1x256xf32>
    %cst_26 = arith.constant 1.000000e+00 : f32
    %42 = vector.broadcast %cst_26 : f32 to vector<1x256xf32>
    %43 = arith.addf %42, %41 : vector<1x256xf32>
    %44 = arith.divf %42, %43 : vector<1x256xf32>
    %45 = vector.shape_cast %44 : vector<1x256xf32> to vector<1x1x256xf32>
    %c0_27 = arith.constant 0 : index
    %c0_28 = arith.constant 0 : index
    %c0_29 = arith.constant 0 : index
    %46 = vector.load %arg10[%c0_27, %c0_28, %c0_29] : memref<1x1x256xf32, #tpu.memory_space<vmem>>, vector<1x1x256xf32>
    tpu.vector_store %arg10[%c0_27, %c0_28, %c0_29], %45 {strides = array<i32>} : memref<1x1x256xf32, #tpu.memory_space<vmem>>, vector<1x1x256xf32>,
    return
  }
  func.func @transform_0(%arg0: i32) -> (i32, i32) {
    %c0_i32 = arith.constant 0 : i32
    %c0_i32_0 = arith.constant 0 : i32
    return %arg0, %c0_i32 : i32, i32
  }
  func.func @transform_1(%arg0: i32) -> (i32, i32) {
    %c0_i32 = arith.constant 0 : i32
    %c0_i32_0 = arith.constant 0 : i32
    %c0_i32_1 = arith.constant 0 : i32
    return %c0_i32, %c0_i32_0 : i32, i32
  }
  func.func @transform_2(%arg0: i32) -> (i32, i32) {
    %c0_i32 = arith.constant 0 : i32
    %c0_i32_0 = arith.constant 0 : i32
    %c0_i32_1 = arith.constant 0 : i32
    return %c0_i32, %c0_i32_0 : i32, i32
  }
  func.func @transform_3(%arg0: i32) -> (i32, i32) {
    %c0_i32 = arith.constant 0 : i32
    %c0_i32_0 = arith.constant 0 : i32
    %c0_i32_1 = arith.constant 0 : i32
    return %c0_i32, %c0_i32_0 : i32, i32
  }
  func.func @transform_4(%arg0: i32) -> (i32, i32) {
    %c0_i32 = arith.constant 0 : i32
    %c0_i32_0 = arith.constant 0 : i32
    %c0_i32_1 = arith.constant 0 : i32
    return %c0_i32, %c0_i32_0 : i32, i32
  }
  func.func @transform_5(%arg0: i32) -> (i32, i32) {
    %c0_i32 = arith.constant 0 : i32
    %c0_i32_0 = arith.constant 0 : i32
    %c0_i32_1 = arith.constant 0 : i32
    return %c0_i32, %c0_i32_0 : i32, i32
  }
  func.func @transform_6(%arg0: i32) -> (i32, i32) {
    %c0_i32 = arith.constant 0 : i32
    %c0_i32_0 = arith.constant 0 : i32
    %c0_i32_1 = arith.constant 0 : i32
    return %c0_i32, %c0_i32_0 : i32, i32
  }
  func.func @transform_7(%arg0: i32) -> (i32, i32) {
    %c0_i32 = arith.constant 0 : i32
    %c0_i32_0 = arith.constant 0 : i32
    %c0_i32_1 = arith.constant 0 : i32
    return %c0_i32, %c0_i32_0 : i32, i32
  }
  func.func @transform_8(%arg0: i32) -> (i32, i32) {
    %c0_i32 = arith.constant 0 : i32
    %c0_i32_0 = arith.constant 0 : i32
    %c0_i32_1 = arith.constant 0 : i32
    return %c0_i32, %c0_i32_0 : i32, i32
  }
  func.func @transform_9(%arg0: i32) -> (i32, i32, i32) {
    %c0_i32 = arith.constant 0 : i32
    %c0_i32_0 = arith.constant 0 : i32
    %c0_i32_1 = arith.constant 0 : i32
    return %arg0, %c0_i32, %c0_i32_0 : i32, i32, i32
  }
}

</mosaic_0001>

<bundles_post_ra>
// kernel: tpu_custom_call.1
= control target key start
LH: loop header
LB: loop body
LE: loop exit
PB: predicated region body
PF: predicated region fallthrough
CT: control target
= control target key end

     0   :  { %s3483_s0 = inlined_call_operand.hbm [shape: f32[512,256], index: 0, kind: input, shape index: {}]   ;;  %s3484_s1 = inlined_call_operand.hbm [shape: bf16[256,256], index: 1, kind: input, shape index: {}]   ;;  %s3485_s2 = inlined_call_operand.vmem [shape: f32[1,256], index: 2, kind: input, shape index: {}]   ;;  %s3486_s3 = inlined_call_operand.vmem [shape: bf16[256,64], index: 3, kind: input, shape index: {}]   ;;  %s3487_s4 = inlined_call_operand.vmem [shape: f32[1,64], index: 4, kind: input, shape index: {}]   ;;  %s3488_s5 = inlined_call_operand.vmem [shape: bf16[64,16], index: 5, kind: input, shape index: {}]   ;;  %s3489_s6 = inlined_call_operand.vmem [shape: f32[1,16], index: 6, kind: input, shape index: {}]   ;;  %s3490_s7 = inlined_call_operand.vmem [shape: f32[8,16], index: 7, kind: input, shape index: {}]   ;;  %s3491_s8 = inlined_call_operand.<no memory space> [shape: f32[1,1], index: 8, kind: input, shape index: {}]   ;;  %s3492_s9 = inlined_call_operand.hbm [shape: f32[2,1,256], index: 9, kind: output, shape index: {}]  }
   0x1   :  { %v14_v0 = vstv %s3491_s8 }
   0x2   :  { %15 = vst [vmem:[#allocation2] sm:$0x1] %v14_v0 }
   0x3   :  { %16 = vsyncpa [#allocation4], 0 }
   0x4   :  { %18 = vsyncpa [#allocation4 + $0x1], 0 }
   0x5   :  { %19 = vsyncpa [#allocation7], 0 }
   0x6   :  { %20 = vsyncpa [#allocation5], 0 }
   0x7   :  { %22 = vsyncpa [#allocation5 + $0x1], 0  ;;  %s2866_s11 = smov 0   ;;  %s2868_s12 = smov 0  }
   0x8   :  { %s2870_s13 = smov 0   ;;  %s2872_s14 = smov 0  }
   0x9 LB: > { %s2887_s8 = sadd.s32 4294967295, %s2802_s14   ;;  %s2155_s15 = sadd.s32 4294967294, %s2802_s14   ;;  %s2802_s14 = sphi %s2872_s14, %s3514_s14   ;;  %s2798_s13 = sphi %s2870_s13, %s3517_s13   ;;  %s2794_s12 = sphi %s2868_s12, %s3516_s12   ;;  %s2790_s11 = sphi %s2866_s11, %s3515_s11  }
   0xa   : > { %p48_p0 = scmp.ne.s32.totalorder %s2794_s12, %s2790_s11  ;;  %p3493_p1 = scmp.eq.s32.totalorder %s2887_s8, 0 }
   0xb   : > { %p246_p3 = scmp.eq.s32.totalorder %s2155_s15, 1  ;;  %p2156_p5 = scmp.ge.s32.totalorder %s2802_s14, 1 }
   0xc   : > { %p2896_p4 = por %p3493_p1, %p48_p0  ;;  %p253_p7 = scmp.lt.s32.totalorder %s2802_s14, 3 }
   0xd   : > { %p2901_p6 = por %p246_p3, %p48_p0  ;;  %s2804_s19 = smov [#allocation6]  }
   0xe   : > { %s3498_s16 = scalar_select %p2896_p4, 1, 0 }
   0xf   : > { %s3499_s17 = scalar_select %p2901_p6, 1, 0 }
  0x10   : > { %p2906_p8 = pnand %p2156_p5, %p253_p7  ;;  %s265_s20 = sshll.u32 %s2804_s19, 4  ;;  %s2910_s20 = int_to_ptr.vmem [resolvable:$true] %s265_s20 }
  0x11   : > { %s2922_s22 = sadd.s32 1, %s2802_s14   ;;  %s35_s23 = sadd.s32 1, %s2798_s13 }
  0x12   : > { %s3500_s18 = scalar_select %p2906_p8, 1, 0 }
  0x13   : > { %p2542_p9 = pneg %p2906_p8  ;;  %3502 = sst [smem:[#allocation12_spill]] %s2922_s22 }
  0x14   : > { %s32_s24 = ssub.s32 %s2802_s14, %s2922_s22  ;;  %s2674_s27 = scalar_lea.hbm %s3484_s1, 4096 }
  0x15   : > { %p2917_p11 = pnand %p2542_p9, %p3493_p1  ;;  %p2675_p12 = scmp.ne.s32.totalorder %s3484_s1, %s2674_s27 }
  0x16   : > { %p2681_p5 = scmp.lt.u32.totalorder %s2674_s27, %s3484_s1 }
  0x17   : > { %p2676_p13 = pneg %p2917_p11 }
  0x19   : > { %p2677_p0 = pnand %p2676_p13, %p2675_p12 }
  0x1b   : > { %p2678_p3 = pneg %p2677_p0 }
  0x1d   : > { %p2683_p7 = pnand %p2681_p5, %p2678_p3 }
  0x1f   : > { %2686 = shalt.err (!%p2683_p7)
}
  0x20   : > { %s2687_s15 = scalar_lea.vmem %s2910_s20, 4096  ;;  %p2695_p2 = scmp.lt.s32.totalorder %s2910_s20, %s2910_s20 }
  0x21   : > { %p2688_p9 = scmp.ne.s32.totalorder %s2910_s20, %s2687_s15  ;;  %p2696_p6 = scmp.lt.s32.totalorder %s2687_s15, %s2687_s15 }
  0x23   : > { %p2690_p10 = pnand %p2688_p9, %p2676_p13  ;;  %p2697_p4 = por %p2696_p6, %p2695_p2 }
  0x25   : > { %p2691_p1 = pneg %p2690_p10 }
  0x27   : > { %p2698_p8 = pnand %p2697_p4, %p2691_p1 }
  0x29   : > { %2701 = shalt.err (!%p2698_p8)
}
  0x2a   : > { %s2805_s19 = smov 128   ;;  %s2806_s25 = smov 8  }
  0x2b   : > { %2545 = dma.hbm_to_vmem [thread:$0]  (!%p2917_p11), %s3484_s1, 4096, %s2910_s20, [#allocation7], %s2805_s19, %s2805_s19, %s2806_s25  }
  0x2c   : > { %p33_p2 = scmp.eq.s32.totalorder %s32_s24, 0  ;;  %p42_p1 = scmp.ne.s32.totalorder %s2798_s13, %s2794_s12 }
  0x2d   : > { %p43_p4 = scmp.eq.s32.totalorder %s2802_s14, 0  ;;  %p2555_p6 = scmp.lt.s32.totalorder %s2802_s14, 2 }
  0x2e   : > { %s2953_s28 = scalar_select %p33_p2, %s2798_s13, %s35_s23  }
  0x2f   : > { %p44_p8 = por %p43_p4, %p42_p1  ;;  %p3503_p10 = scmp.eq.s32.totalorder %s2887_s8, 1 }
  0x30   : > { %s300_s30 = sand.u32 1, %s2798_s13   ;;  %s2278_s10 = sshll.u32 %s2802_s14, 13 }
  0x31   : > { %p2957_p12 = por %p3503_p10, %p42_p1  ;;  %s2159_s15 = sshll.u32 %s300_s30, 9 }
  0x32   : > { %s2966_s26 = scalar_lea.hbm %s3483_s0, %s2278_s10  ;;  %s304_s20 = scalar_lea.vmem [#allocation3], %s2159_s15 }
  0x33   : > { %s312_s23 = sshll.u32 %s304_s20, 4  ;;  %p2968_p11 = pnand %p2555_p6, %p44_p8  ;;  %s2972_s23 = int_to_ptr.vmem [resolvable:$true] %s312_s23 }
  0x34   : > { %s2974_s19 = scalar_lea.sflag [#allocation4], %s300_s30  ;;  %s2702_s25 = scalar_lea.hbm %s2966_s26, 8192 }
  0x35   : > { %p2703_p13 = scmp.ne.s32.totalorder %s2966_s26, %s2702_s25  ;;  %p2704_p0 = pneg %p2968_p11 }
  0x36   : > { %s2707_s10 = scalar_lea.hbm %s3483_s0, 16384  ;;  %p2708_p7 = scmp.lt.u32.totalorder %s2966_s26, %s3483_s0 }
  0x37   : > { %p2705_p3 = pnand %p2704_p0, %p2703_p13  ;;  %p2709_p9 = scmp.lt.u32.totalorder %s2707_s10, %s2702_s25 }
  0x38   : > { %p2711_p1 = scmp.lt.u32.totalorder %s2702_s25, %s2966_s26 }
  0x39   : > { %p2706_p5 = pneg %p2705_p3  ;;  %p2710_p2 = por %p2709_p9, %p2708_p7 }
  0x3b   : > { %p2712_p4 = por %p2711_p1, %p2710_p2 }
  0x3d   : > { %p2713_p6 = pnand %p2712_p4, %p2706_p5 }
  0x3f   : > { %2716 = shalt.err (!%p2713_p6)
}
  0x40   : > { %s2717_s30 = scalar_lea.vmem %s2972_s23, 8192  ;;  %s2807_s20 = smov [#allocation3]  }
  0x41   : > { %p2718_p8 = scmp.ne.s32.totalorder %s2972_s23, %s2717_s30  ;;  %s2722_s22 = sshll.u32 %s2807_s20, 4  ;;  %s2723_s22 = int_to_ptr.vmem [resolvable:$false] %s2722_s22 }
  0x42   : > { %s2724_s27 = scalar_lea.vmem %s2723_s22, 16384  ;;  %p2725_p3 = scmp.lt.s32.totalorder %s2972_s23, %s2723_s22 }
  0x43   : > { %p2720_p10 = pnand %p2718_p8, %p2704_p0  ;;  %p2726_p7 = scmp.lt.s32.totalorder %s2724_s27, %s2717_s30 }
  0x45   : > { %p2721_p13 = pneg %p2720_p10  ;;  %p2727_p9 = por %p2726_p7, %p2725_p3 }
  0x47   : > { %p2728_p2 = pnand %p2727_p9, %p2721_p13 }
  0x49   : > { %2731 = shalt.err (!%p2728_p2)
}
  0x4a   : > { %s2808_s25 = smov 256   ;;  %s2809_s10 = smov 16  }
  0x4b   : > { %2549 = dma.hbm_to_vmem [thread:$0]  (!%p2968_p11), %s2966_s26, 8192, %s2972_s23, %s2974_s19, %s2808_s25, %s2808_s25, %s2809_s10  }
  0x4c   : > { %p3506_p0 = scmp.ne.s32.totalorder %s3500_s18, 0 }
  0x4d   : > { %s3005_s15 = sand.u32 (!%p3506_p0), 1, %s2794_s12   ;;  %p3507_p5 = scmp.ne.s32.totalorder (!%p3506_p0), %s3498_s16, 0 }
  0x4e   : > { %324 = sbr.rel (%p3506_p0) target bundleno = 1220 (0x4c4), region = 56  ;;  %s2164_s21 = sshll.u32 (!%p3506_p0), %s3005_s15, 9 }
  0x4f   : > { %s327_s30 = scalar_lea.sflag (!%p3506_p0), [#allocation4], %s3005_s15  ;;  %s3009_s20 = scalar_lea.vmem (!%p3506_p0), [#allocation3], %s2164_s21 }
  0x55   : > { %2777 = dma.done.wait (%p3507_p5), %s327_s30, 8192  }
  0x56   : > { %2779 = vsyncadd (%p3507_p5), %s327_s30, 4294959104  ;;  %p3508_p11 = scmp.eq.s32.totalorder %s2887_s8, 0 }
  0x58   : > { %2781 = dma.done.wait (%p3508_p11), [#allocation7], 4096   ;;  %p3509_p1 = pmov %p3508_p11 }
  0x59   : > { %v2598_v1 = vld [vmem:[#allocation6 + $0x4] ss:$8 sps:$4 sm:$0xff]   ;;  %v2600_v2 = vld [vmem:[#allocation6] ss:$8 sps:$4 sm:$0xff]   ;;  %v2601_v3 = vld [vmem:[#allocation6 + $0x14] ss:$8 sps:$4 sm:$0xff]  }
  0x5a   : > { %2783 = vsyncadd (%p3509_p1), [#allocation7], 4294963200  ;;  %671 = vmatprep.subr.bf16.mxu0 %v2598_v1  ;;  %v2603_v4 = vld [vmem:[#allocation6 + $0x10] ss:$8 sps:$4 sm:$0xff]   ;;  %v2604_v5 = vld [vmem:[#allocation6 + $0x24] ss:$8 sps:$4 sm:$0xff]  }
  0x5b   : > { %672 = vmatpush1.bf16.msra.mxu0 %v2600_v2  ;;  %v2606_v6 = vld [vmem:[#allocation6 + $0x20] ss:$8 sps:$4 sm:$0xff]   ;;  %v2607_v7 = vld [vmem:[#allocation6 + $0x34] ss:$8 sps:$4 sm:$0xff]   ;;  %v2609_v8 = vld [vmem:[#allocation6 + $0x30] ss:$8 sps:$4 sm:$0xff]  }
  0x5c   : > { %673 = vmatprep.subr.bf16.mxu0 %v2601_v3  ;;  %v2610_v9 = vld [vmem:[#allocation6 + $0x44] ss:$8 sps:$4 sm:$0xff]   ;;  %v2612_v10 = vld [vmem:[#allocation6 + $0x40] ss:$8 sps:$4 sm:$0xff]   ;;  %v2613_v11 = vld [vmem:[#allocation6 + $0x54] ss:$8 sps:$4 sm:$0xff]  }
  0x5d   : > { %v2615_v12 = vld [vmem:[#allocation6 + $0x50] ss:$8 sps:$4 sm:$0xff]   ;;  %v2616_v13 = vld [vmem:[#allocation6 + $0x64] ss:$8 sps:$4 sm:$0xff]   ;;  %v2618_v17 = vld [vmem:[#allocation6 + $0x60] ss:$8 sps:$4 sm:$0xff]  }
  0x5e   : > { %v372_v14 = vld [vmem:[%s3009_s20 + $0x8] sm:$0xff]  ;;  %v374_v15 = vld [vmem:[%s3009_s20 + $0x18] sm:$0xff]  ;;  %v371_v39 = vld [vmem:[%s3009_s20] sm:$0xff]  ;;  %s2166_s21 = sshll.u32 %s3005_s15, 1  ;;  %s2279_s30 = sshll.u32 %s2887_s8, 5 }
  0x5f   : > { %674 = vmatpush1.bf16.msra.mxu0 %v2603_v4  ;;  %v436_v16 = vpack.c.bf16 %v374_v15, %v372_v14  ;;  %v2619_v18 = vld [vmem:[#allocation6 + $0x74] ss:$8 sps:$4 sm:$0xff]   ;;  %v2621_v19 = vld [vmem:[#allocation6 + $0x70] ss:$8 sps:$4 sm:$0xff]   ;;  %v2622_v20 = vld [vmem:[#allocation6 + $0x84] ss:$8 sps:$4 sm:$0xff]   ;;  %s3439_s24 = scalar_lea.hbm %s3492_s9, %s2279_s30 }
  0x60   : > { %675 = vmatprep.subr.bf16.mxu0 %v2604_v5  ;;  %v2624_v21 = vld [vmem:[#allocation6 + $0x80] ss:$8 sps:$4 sm:$0xff]   ;;  %v2625_v22 = vld [vmem:[#allocation6 + $0x94] ss:$8 sps:$4 sm:$0xff]   ;;  %v2627_v23 = vld [vmem:[#allocation6 + $0x90] ss:$8 sps:$4 sm:$0xff]  }
  0x61   : > { %703 = vmatprep.mubr.bf16.mxu0 %v436_v16  ;;  %v2628_v24 = vld [vmem:[#allocation6 + $0xa4] ss:$8 sps:$4 sm:$0xff]   ;;  %v2630_v25 = vld [vmem:[#allocation6 + $0xa0] ss:$8 sps:$4 sm:$0xff]   ;;  %v2631_v26 = vld [vmem:[#allocation6 + $0xb4] ss:$8 sps:$4 sm:$0xff]  }
  0x62   : > { %v2633_v27 = vld [vmem:[#allocation6 + $0xb0] ss:$8 sps:$4 sm:$0xff]   ;;  %v2634_v28 = vld [vmem:[#allocation6 + $0xc4] ss:$8 sps:$4 sm:$0xff]   ;;  %v2636_v29 = vld [vmem:[#allocation6 + $0xc0] ss:$8 sps:$4 sm:$0xff]  }
  0x63   : > { %676 = vmatpush1.bf16.msra.mxu0 %v2606_v6  ;;  %v2637_v30 = vld [vmem:[#allocation6 + $0xd4] ss:$8 sps:$4 sm:$0xff]   ;;  %v2639_v31 = vld [vmem:[#allocation6 + $0xd0] ss:$8 sps:$4 sm:$0xff]   ;;  %v2640_v32 = vld [vmem:[#allocation6 + $0xe4] ss:$8 sps:$4 sm:$0xff]  }
  0x64   : > { %677 = vmatprep.subr.bf16.mxu0 %v2607_v7  ;;  %v2642_v33 = vld [vmem:[#allocation6 + $0xe0] ss:$8 sps:$4 sm:$0xff]   ;;  %v2643_v34 = vld [vmem:[#allocation6 + $0xf4] ss:$8 sps:$4 sm:$0xff]   ;;  %v2645_v38 = vld [vmem:[#allocation6 + $0xf0] ss:$8 sps:$4 sm:$0xff]  }
  0x65   : > { %v2646_v35 = vld [vmem:[%s3486_s3 + $0x40] sm:$0xff]   ;;  %v2648_v37 = vld [vmem:[%s3486_s3 + $0x48] sm:$0xff]   ;;  %v373_v40 = vld [vmem:[%s3009_s20 + $0x10] sm:$0xff]  ;;  %s368_s16 = scalar_lea.vmem [#allocation8], %s2166_s21  ;;  %s2061_s19 = scalar_lea.sflag [#allocation5], %s3005_s15 }
  0x66   : > { %v2647_v36 = vld [vmem:[%s3486_s3] sm:$0xff]   ;;  %v376_v41 = vld [vmem:[%s3009_s20 + $0x28] sm:$0xff]  ;;  %2280 = vmatprep.subr.bf16.mxu1 %v2646_v35  ;;  %v435_v44 = vpack.c.bf16 %v373_v40, %v371_v39  ;;  %v2652_v48 = vld [vmem:[%s3486_s3 + $0x58] sm:$0xff]   ;;  %s2075_s18 = sshll.u32 %s368_s16, 4  ;;  %s2812_s8 = smov [#allocation8]   ;;  %s3441_s18 = int_to_ptr.vmem [resolvable:$true] %s2075_s18 }
  0x67   : > { %678 = vmatpush1.bf16.msra.mxu0 %v2609_v8  ;;  %v378_v42 = vld [vmem:[%s3009_s20 + $0x38] sm:$0xff]  ;;  %2281 = vmatpush3.bf16.msra.mxu1 %v2647_v36  ;;  %v2649_v43 = vld [vmem:[%s3486_s3 + $0x8] sm:$0xff]   ;;  %v2650_v45 = vld [vmem:[%s3486_s3 + $0x50] sm:$0xff]   ;;  %s2732_s22 = scalar_lea.vmem %s3441_s18, 32  ;;  %s2736_s27 = sshll.u32 %s2812_s8, 4  ;;  %s2737_s27 = int_to_ptr.vmem [resolvable:$false] %s2736_s27 }
  0x68   : > { %679 = vmatprep.subr.bf16.mxu0 %v2610_v9  ;;  %2282 = vmatprep.subr.bf16.mxu1 %v2648_v37  ;;  %v438_v46 = vpack.c.bf16 %v378_v42, %v376_v41  ;;  %v2651_v47 = vld [vmem:[%s3486_s3 + $0x10] sm:$0xff]   ;;  %v375_v49 = vld [vmem:[%s3009_s20 + $0x20] sm:$0xff]  ;;  %v382_v52 = vld [vmem:[%s3009_s20 + $0x58] sm:$0xff]  ;;  %p2733_p4 = scmp.ne.s32.totalorder %s3441_s18, %s2732_s22  ;;  %s2738_s25 = scalar_lea.vmem %s2737_s27, 64 }
  0x69   : > { %v377_v50 = vld [vmem:[%s3009_s20 + $0x30] sm:$0xff]  ;;  %v380_v51 = vld [vmem:[%s3009_s20 + $0x48] sm:$0xff]  ;;  %v2654_v55 = vld [vmem:[%s3486_s3 + $0x60] sm:$0xff]   ;;  %p2739_p10 = scmp.lt.s32.totalorder %s3441_s18, %s2737_s27  ;;  %p2740_p13 = scmp.lt.s32.totalorder %s2738_s25, %s2732_s22 }
  0x6a   : > { %v2653_v53 = vld [vmem:[%s3486_s3 + $0x18] sm:$0xff]   ;;  %v437_v54 = vpack.c.bf16 %v377_v50, %v375_v49  ;;  %v440_v56 = vpack.c.bf16 %v382_v52, %v380_v51  ;;  %v2655_v57 = vld [vmem:[%s3486_s3 + $0x20] sm:$0xff]   ;;  %v384_v60 = vld [vmem:[%s3009_s20 + $0x68] sm:$0xff]  ;;  %p2734_p6 = pnand %p2733_p4, %p2957_p12 }
  0x6b   : > { %680 = vmatpush1.bf16.msra.mxu0 %v2612_v10  ;;  %2283 = vmatpush3.bf16.msra.mxu1 %v2649_v43  ;;  %v379_v58 = vld [vmem:[%s3009_s20 + $0x40] sm:$0xff]  ;;  %v381_v59 = vld [vmem:[%s3009_s20 + $0x50] sm:$0xff]  ;;  %v386_v61 = vld [vmem:[%s3009_s20 + $0x78] sm:$0xff]  ;;  %p2741_p3 = por %p2740_p13, %p2739_p10 }
  0x6c   : > { %681 = vmatprep.subr.bf16.mxu0 %v2613_v11  ;;  %2284 = vmatprep.subr.bf16.mxu1 %v2650_v45  ;;  %v439_v62 = vpack.c.bf16 %v381_v59, %v379_v58  ;;  %v442_v63 = vpack.c.bf16 %v386_v61, %v384_v60  ;;  %v383_v0 = vld [vmem:[%s3009_s20 + $0x60] sm:$0xff]  ;;  %v385_v1 = vld [vmem:[%s3009_s20 + $0x70] sm:$0xff]  ;;  %v388_v2 = vld [vmem:[%s3009_s20 + $0x88] sm:$0xff]  ;;  %p2735_p8 = pneg %p2734_p6 }
  0x6d   : > { %v390_v3 = vld [vmem:[%s3009_s20 + $0x98] sm:$0xff]  ;;  %v441_v4 = vpack.c.bf16 %v385_v1, %v383_v0  ;;  %v387_v6 = vld [vmem:[%s3009_s20 + $0x80] sm:$0xff]  ;;  %v389_v7 = vld [vmem:[%s3009_s20 + $0x90] sm:$0xff] }
  0x6e   : > { %v444_v5 = vpack.c.bf16 %v390_v3, %v388_v2  ;;  %v392_v8 = vld [vmem:[%s3009_s20 + $0xa8] sm:$0xff]  ;;  %v394_v9 = vld [vmem:[%s3009_s20 + $0xb8] sm:$0xff]  ;;  %v443_v10 = vpack.c.bf16 %v389_v7, %v387_v6  ;;  %v407_v36 = vld [vmem:[%s3009_s20 + $0x120] sm:$0xff]  ;;  %p2742_p7 = pnand %p2741_p3, %p2735_p8 }
  0x6f   : > { %682 = vmatpush1.bf16.msra.mxu0 %v2615_v12  ;;  %2285 = vmatpush3.bf16.msra.mxu1 %v2651_v47  ;;  %v446_v11 = vpack.c.bf16 %v394_v9, %v392_v8  ;;  %v391_v12 = vld [vmem:[%s3009_s20 + $0xa0] sm:$0xff]  ;;  %v396_v14 = vld [vmem:[%s3009_s20 + $0xc8] sm:$0xff]  ;;  %v398_v15 = vld [vmem:[%s3009_s20 + $0xd8] sm:$0xff] }
  0x70   : > { %683 = vmatprep.subr.bf16.mxu0 %v2616_v13  ;;  %2286 = vmatprep.subr.bf16.mxu1 %v2652_v48  ;;  %v393_v13 = vld [vmem:[%s3009_s20 + $0xb0] sm:$0xff]  ;;  %v414_v39 = vld [vmem:[%s3009_s20 + $0x158] sm:$0xff]  ;;  %v411_v42 = vld [vmem:[%s3009_s20 + $0x140] sm:$0xff] }
  0x71   : > { %v445_v16 = vpack.c.bf16 %v393_v13, %v391_v12  ;;  %v409_v37 = vld [vmem:[%s3009_s20 + $0x130] sm:$0xff]  ;;  %v418_v45 = vld [vmem:[%s3009_s20 + $0x178] sm:$0xff]  ;;  %v415_v48 = vld [vmem:[%s3009_s20 + $0x160] sm:$0xff] }
  0x72   : > { %v453_v40 = vpack.c.bf16 %v409_v37, %v407_v36  ;;  %v413_v43 = vld [vmem:[%s3009_s20 + $0x150] sm:$0xff]  ;;  %v2656_v50 = vld [vmem:[%s3486_s3 + $0x68] sm:$0xff]   ;;  %v422_v52 = vld [vmem:[%s3009_s20 + $0x198] sm:$0xff] }
  0x73   : > { %684 = vmatpush1.bf16.msra.mxu0 %v2618_v17  ;;  %2287 = vmatpush3.bf16.msra.mxu1 %v2653_v53  ;;  %v448_v17 = vpack.c.bf16 %v398_v15, %v396_v14  ;;  %v417_v49 = vld [vmem:[%s3009_s20 + $0x170] sm:$0xff]  ;;  %v420_v51 = vld [vmem:[%s3009_s20 + $0x188] sm:$0xff]  ;;  %v419_v58 = vld [vmem:[%s3009_s20 + $0x180] sm:$0xff] }
  0x74   : > { %685 = vmatprep.subr.bf16.mxu0 %v2619_v18  ;;  %2288 = vmatprep.subr.bf16.mxu1 %v2654_v55  ;;  %v395_v18 = vld [vmem:[%s3009_s20 + $0xc0] sm:$0xff]  ;;  %v460_v55 = vpack.c.bf16 %v422_v52, %v420_v51  ;;  %v421_v59 = vld [vmem:[%s3009_s20 + $0x190] sm:$0xff]  ;;  %v424_v61 = vld [vmem:[%s3009_s20 + $0x1a8] sm:$0xff] }
  0x75   : > { %v2657_v53 = vld [vmem:[%s3486_s3 + $0x28] sm:$0xff]   ;;  %v2660_v60 = vld [vmem:[%s3486_s3 + $0x78] sm:$0xff]   ;;  %v459_v0 = vpack.c.bf16 %v421_v59, %v419_v58 }
  0x76   : > { %v423_v2 = vld [vmem:[%s3009_s20 + $0x1a0] sm:$0xff]  ;;  %v425_v3 = vld [vmem:[%s3009_s20 + $0x1b0] sm:$0xff] }
  0x77   : > { %686 = vmatpush1.bf16.msra.mxu0 %v2621_v19  ;;  %2289 = vmatpush3.bf16.msra.mxu1 %v2655_v57  ;;  %v397_v19 = vld [vmem:[%s3009_s20 + $0xd0] sm:$0xff]  ;;  %v461_v6 = vpack.c.bf16 %v425_v3, %v423_v2  ;;  %v427_v8 = vld [vmem:[%s3009_s20 + $0x1c0] sm:$0xff] }
  0x78   : > { %687 = vmatprep.subr.bf16.mxu0 %v2622_v20  ;;  %v400_v20 = vld [vmem:[%s3009_s20 + $0xe8] sm:$0xff]  ;;  %2290 = vmatprep.subr.bf16.mxu1 %v2656_v50  ;;  %v429_v9 = vld [vmem:[%s3009_s20 + $0x1d0] sm:$0xff]  ;;  %v431_v14 = vld [vmem:[%s3009_s20 + $0x1e0] sm:$0xff] }
  0x79   : > { %v2659_v57 = vld [vmem:[%s3486_s3 + $0x30] sm:$0xff]   ;;  %v463_v12 = vpack.c.bf16 %v429_v9, %v427_v8 }
  0x7a   : > { %v433_v15 = vld [vmem:[%s3009_s20 + $0x1f0] sm:$0xff] }
  0x7b   : > { %688 = vmatpush1.bf16.msra.mxu0 %v2624_v21  ;;  %v402_v21 = vld [vmem:[%s3009_s20 + $0xf8] sm:$0xff]  ;;  %2291 = vmatpush3.bf16.msra.mxu1 %v2657_v53 }
  0x7c   : > { %689 = vmatprep.subr.bf16.mxu0 %v2625_v22  ;;  %v447_v22 = vpack.c.bf16 %v397_v19, %v395_v18 }
  0x7f   : > { %690 = vmatpush1.bf16.msra.mxu0 %v2627_v23  ;;  %v450_v23 = vpack.c.bf16 %v402_v21, %v400_v20  ;;  %v499_v20 = vld [vmem:[%s3485_s2] sm:$0x3] }
  0x80   : > { %691 = vmatprep.subr.bf16.mxu0 %v2628_v24  ;;  %v399_v24 = vld [vmem:[%s3009_s20 + $0xe0] sm:$0xff] }
  0x83   : > { %692 = vmatpush1.bf16.msra.mxu0 %v2630_v25  ;;  %v401_v25 = vld [vmem:[%s3009_s20 + $0xf0] sm:$0xff] }
  0x84   : > { %693 = vmatprep.subr.bf16.mxu0 %v2631_v26  ;;  %v404_v26 = vld [vmem:[%s3009_s20 + $0x108] sm:$0xff] }
  0x87   : > { %694 = vmatpush1.bf16.msra.mxu0 %v2633_v27  ;;  %v406_v27 = vld [vmem:[%s3009_s20 + $0x118] sm:$0xff] }
  0x88   : > { %695 = vmatprep.subr.bf16.mxu0 %v2634_v28  ;;  %v449_v28 = vpack.c.bf16 %v401_v25, %v399_v24 }
  0x8b   : > { %696 = vmatpush1.bf16.msra.mxu0 %v2636_v29  ;;  %v452_v29 = vpack.c.bf16 %v406_v27, %v404_v26 }
  0x8c   : > { %697 = vmatprep.subr.bf16.mxu0 %v2637_v30  ;;  %v403_v30 = vld [vmem:[%s3009_s20 + $0x100] sm:$0xff] }
  0x8f   : > { %698 = vmatpush1.bf16.msra.mxu0 %v2639_v31  ;;  %v405_v31 = vld [vmem:[%s3009_s20 + $0x110] sm:$0xff] }
  0x90   : > { %699 = vmatprep.subr.bf16.mxu0 %v2640_v32  ;;  %v408_v32 = vld [vmem:[%s3009_s20 + $0x128] sm:$0xff] }
  0x93   : > { %700 = vmatpush1.bf16.msra.mxu0 %v2642_v33  ;;  %v410_v33 = vld [vmem:[%s3009_s20 + $0x138] sm:$0xff] }
  0x94   : > { %701 = vmatprep.subr.bf16.mxu0 %v2643_v34  ;;  %v451_v34 = vpack.c.bf16 %v405_v31, %v403_v30  ;;  %v454_v35 = vpack.c.bf16 %v410_v33, %v408_v32 }
  0x97   : > { %702 = vmatpush1.bf16.msra.mxu0 %v2645_v38  ;;  %v412_v38 = vld [vmem:[%s3009_s20 + $0x148] sm:$0xff] }
  0x98   : > { %v456_v41 = vpack.c.bf16 %v414_v39, %v412_v38 }
  0x9a   : > { %704 = vmatmul.mubr.bf16.vlgmr.msra.gmra.mrb[0].mxu0 %v435_v44  ;;  %v416_v44 = vld [vmem:[%s3009_s20 + $0x168] sm:$0xff] }
  0x9b   : > { %713 = vmatprep.mubr.bf16.mxu0 %v438_v46  ;;  %v455_v46 = vpack.c.bf16 %v413_v43, %v411_v42  ;;  %v458_v47 = vpack.c.bf16 %v418_v45, %v416_v44 }
  0xa2   : > { %714 = vmatmul.mubr.bf16.gmra.mrb[4].mxu0 %v437_v54  ;;  %v457_v54 = vpack.c.bf16 %v417_v49, %v415_v48 }
  0xa3   : > { %723 = vmatprep.mubr.bf16.mxu0 %v440_v56  ;;  %v2658_v56 = vld [vmem:[%s3486_s3 + $0x70] sm:$0xff]  }
  0xa4   : > { %2292 = vmatprep.subr.bf16.mxu1 %v2658_v56 }
  0xa5   : > { %2293 = vmatpush3.bf16.msra.mxu1 %v2659_v57 }
  0xa6   : > { %2294 = vmatprep.subr.bf16.mxu1 %v2660_v60 }
  0xaa   : > { %724 = vmatmul.mubr.bf16.gmra.mrb[8].mxu0 %v439_v62  ;;  %v426_v62 = vld [vmem:[%s3009_s20 + $0x1b8] sm:$0xff] }
  0xab   : > { %733 = vmatprep.mubr.bf16.mxu0 %v442_v63  ;;  %v2661_v63 = vld [vmem:[%s3486_s3 + $0x38] sm:$0xff]   ;;  %v462_v1 = vpack.c.bf16 %v426_v62, %v424_v61 }
  0xac   : > { %2295 = vmatpush3.bf16.msra.mxu1 %v2661_v63 }
  0xb2   : > { %734 = vmatmul.mubr.bf16.gmra.mrb[12].mxu0 %v441_v4  ;;  %v428_v4 = vld [vmem:[%s3009_s20 + $0x1c8] sm:$0xff] }
  0xb3   : > { %743 = vmatprep.mubr.bf16.mxu0 %v444_v5  ;;  %v430_v5 = vld [vmem:[%s3009_s20 + $0x1d8] sm:$0xff] }
  0xb4   : > { %v464_v7 = vpack.c.bf16 %v430_v5, %v428_v4 }
  0xba   : > { %744 = vmatmul.mubr.bf16.gmra.mrb[16].mxu0 %v443_v10  ;;  %v432_v10 = vld [vmem:[%s3009_s20 + $0x1e8] sm:$0xff] }
  0xbb   : > { %753 = vmatprep.mubr.bf16.mxu0 %v446_v11  ;;  %v434_v11 = vld [vmem:[%s3009_s20 + $0x1f8] sm:$0xff] }
  0xbc   : > { %v466_v13 = vpack.c.bf16 %v434_v11, %v432_v10 }
  0xc2   : > { %754 = vmatmul.mubr.bf16.gmra.mrb[20].mxu0 %v445_v16  ;;  %v465_v16 = vpack.c.bf16 %v433_v15, %v431_v14 }
  0xc3   : > { %763 = vmatprep.mubr.bf16.mxu0 %v448_v17  ;;  %v501_v17 = vlaneseq }
  0xc5   : > { %v3132_v18 = vshrl.u32 %v501_v17, 7 }
  0xc7   : > { %v503_v19 = vsub.s32 0, %v3132_v18  ;;  %v507_v21 = vsub.s32 1, %v3132_v18 }
  0xca   : > { %764 = vmatmul.mubr.bf16.gmra.mrb[24].mxu0 %v447_v22  ;;  %v3141_v22 = vrot.slane %v499_v20, %v503_v19 }
  0xcb   : > { %773 = vmatprep.mubr.bf16.mxu0 %v450_v23  ;;  %v3143_v23 = vrot.slane %v499_v20, %v507_v21 }
  0xd2   : > { %774 = vmatmul.mubr.bf16.gmra.mrb[28].mxu0 %v449_v28 }
  0xd3   : > { %783 = vmatprep.mubr.bf16.mxu0 %v452_v29 }
  0xda   : > { %784 = vmatmul.mubr.bf16.gmra.mrb[32].mxu0 %v451_v34  ;;  %v2662_v34 = vld [vmem:[%s3488_s5] sm:$0xff]  }
  0xdb   : > { %793 = vmatprep.mubr.bf16.mxu0 %v454_v35  ;;  %2446 = vmatprep.subr.bf16.mxu1 %v2662_v34 }
  0xe2   : > { %794 = vmatmul.mubr.bf16.gmra.mrb[36].mxu0 %v453_v40 }
  0xe3   : > { %803 = vmatprep.mubr.bf16.mxu0 %v456_v41 }
  0xea   : > { %804 = vmatmul.mubr.bf16.gmra.mrb[40].mxu0 %v455_v46 }
  0xeb   : > { %813 = vmatprep.mubr.bf16.mxu0 %v458_v47 }
  0xf2   : > { %814 = vmatmul.mubr.bf16.gmra.mrb[44].mxu0 %v457_v54 }
  0xf3   : > { %823 = vmatprep.mubr.bf16.mxu0 %v460_v55 }
  0xfa   : > { %824 = vmatmul.mubr.bf16.gmra.mrb[48].mxu0 %v459_v0 }
  0xfb   : > { %833 = vmatprep.mubr.bf16.mxu0 %v462_v1 }
 0x102   : > { %834 = vmatmul.mubr.bf16.gmra.mrb[52].mxu0 %v461_v6 }
 0x103   : > { %843 = vmatprep.mubr.bf16.mxu0 %v464_v7 }
 0x10a   : > { %844 = vmatmul.mubr.bf16.gmra.mrb[56].mxu0 %v463_v12 }
 0x10b   : > { %853 = vmatprep.mubr.bf16.mxu0 %v466_v13 }
 0x112   : > { %854 = vmatmul.mubr.bf16.gmra.mrb[60].mxu0 %v465_v16 }
 0x16d   : > { %v705_v24 = vpop.f32.mrb[0].mxu0 }
 0x16e   : > { %v706_v25 = vadd.f32 %v705_v24, %v3141_v22  ;;  %v707_v26 = vpop.f32.mrb[1].mxu0 }
 0x16f   : > { %v708_v27 = vadd.f32 %v707_v26, %v3143_v23  ;;  %v709_v28 = vpop.f32.mrb[2].mxu0 }
 0x170   : > { %v928_v29 = vmul.f32 0.01, %v706_v25  ;;  %v710_v30 = vadd.f32 %v709_v28, %v3141_v22  ;;  %v711_v31 = vpop.f32.mrb[3].mxu0  ;;  %vm864_vm0 = vcmp.gt.f32.partialorder %v706_v25, 0.0 }
 0x171   : > { %v929_v32 = vmul.f32 0.01, %v708_v27  ;;  %v712_v33 = vadd.f32 %v711_v31, %v3143_v23  ;;  %vm865_vm2 = vcmp.gt.f32.partialorder %v708_v27, 0.0 }
 0x172   : > { %vm866_vm1 = vcmp.gt.f32.partialorder %v710_v30, 0.0  ;;  %v930_v35 = vmul.f32 0.01, %v710_v30  ;;  %v992_v37 = vsel %vm864_vm0, %v706_v25, %v928_v29 }
 0x173   : > { %v931_v36 = vmul.f32 0.01, %v712_v33  ;;  %vm867_vm3 = vcmp.gt.f32.partialorder %v712_v33, 0.0  ;;  %v993_v40 = vsel %vm865_vm2, %v708_v27, %v929_v32 }
 0x174   : > { %v994_v38 = vsel %vm866_vm1, %v710_v30, %v930_v35 }
 0x175   : > { %v715_v39 = vpop.f32.mrb[4].mxu0  ;;  %v995_v41 = vsel %vm867_vm3, %v712_v33, %v931_v36  ;;  %v1056_v42 = vpack.c.bf16 %v994_v38, %v992_v37 }
 0x176   : > { %v716_v43 = vadd.f32 %v715_v39, %v3141_v22  ;;  %v717_v44 = vpop.f32.mrb[5].mxu0  ;;  %v1057_v45 = vpack.c.bf16 %v995_v41, %v993_v40 }
 0x177   : > { %v718_v46 = vadd.f32 %v717_v44, %v3143_v23  ;;  %v719_v47 = vpop.f32.mrb[6].mxu0 }
 0x178   : > { %v932_v48 = vmul.f32 0.01, %v716_v43  ;;  %v720_v49 = vadd.f32 %v719_v47, %v3141_v22  ;;  %v721_v50 = vpop.f32.mrb[7].mxu0  ;;  %1255 = vmatprep.mubr.bf16.mxu1 %v1057_v45  ;;  %vm868_vm4 = vcmp.gt.f32.partialorder %v716_v43, 0.0 }
 0x179   : > { %v933_v51 = vmul.f32 0.01, %v718_v46  ;;  %v722_v52 = vadd.f32 %v721_v50, %v3143_v23  ;;  %1256 = vmatmul.mubr.bf16.vlgmr.msra.gmra.mrb[0].mxu1 %v1056_v42  ;;  %vm869_vm5 = vcmp.gt.f32.partialorder %v718_v46, 0.0 }
 0x17a   : > { %vm870_vm6 = vcmp.gt.f32.partialorder %v720_v49, 0.0  ;;  %v934_v53 = vmul.f32 0.01, %v720_v49  ;;  %2447 = vmatpush3.bf16.msra.mxu1 %v2662_v34  ;;  %v996_v55 = vsel %vm868_vm4, %v716_v43, %v932_v48 }
 0x17b   : > { %vm871_vm7 = vcmp.gt.f32.partialorder %v722_v52, 0.0  ;;  %v935_v54 = vmul.f32 0.01, %v722_v52  ;;  %v997_v58 = vsel %vm869_vm5, %v718_v46, %v933_v51 }
 0x17c   : > { %v998_v56 = vsel %vm870_vm6, %v720_v49, %v934_v53 }
 0x17d   : > { %v725_v57 = vpop.f32.mrb[8].mxu0  ;;  %v999_v59 = vsel %vm871_vm7, %v722_v52, %v935_v54  ;;  %v1058_v60 = vpack.c.bf16 %v998_v56, %v996_v55 }
 0x17e   : > { %v726_v61 = vadd.f32 %v725_v57, %v3141_v22  ;;  %v727_v62 = vpop.f32.mrb[9].mxu0  ;;  %v1059_v63 = vpack.c.bf16 %v999_v59, %v997_v58 }
 0x17f   : > { %v728_v0 = vadd.f32 %v727_v62, %v3143_v23  ;;  %v729_v1 = vpop.f32.mrb[10].mxu0 }
 0x180   : > { %v936_v2 = vmul.f32 0.01, %v726_v61  ;;  %v730_v3 = vadd.f32 %v729_v1, %v3141_v22  ;;  %v731_v4 = vpop.f32.mrb[11].mxu0  ;;  %1263 = vmatprep.mubr.bf16.mxu1 %v1059_v63  ;;  %vm872_vm8 = vcmp.gt.f32.partialorder %v726_v61, 0.0 }
 0x181   : > { %v937_v5 = vmul.f32 0.01, %v728_v0  ;;  %v732_v6 = vadd.f32 %v731_v4, %v3143_v23  ;;  %1264 = vmatmul.mubr.bf16.gmra.mrb[4].mxu1 %v1058_v60  ;;  %vm873_vm9 = vcmp.gt.f32.partialorder %v728_v0, 0.0 }
 0x182   : > { %vm874_vm10 = vcmp.gt.f32.partialorder %v730_v3, 0.0  ;;  %v938_v7 = vmul.f32 0.01, %v730_v3  ;;  %v1000_v9 = vsel %vm872_vm8, %v726_v61, %v936_v2 }
 0x183   : > { %vm875_vm11 = vcmp.gt.f32.partialorder %v732_v6, 0.0  ;;  %v939_v8 = vmul.f32 0.01, %v732_v6  ;;  %v1001_v12 = vsel %vm873_vm9, %v728_v0, %v937_v5 }
 0x184   : > { %v1002_v10 = vsel %vm874_vm10, %v730_v3, %v938_v7 }
 0x185   : > { %v735_v11 = vpop.f32.mrb[12].mxu0  ;;  %v1003_v13 = vsel %vm875_vm11, %v732_v6, %v939_v8  ;;  %v1060_v14 = vpack.c.bf16 %v1002_v10, %v1000_v9 }
 0x186   : > { %v736_v15 = vadd.f32 %v735_v11, %v3141_v22  ;;  %v737_v16 = vpop.f32.mrb[13].mxu0  ;;  %v1061_v20 = vpack.c.bf16 %v1003_v13, %v1001_v12 }
 0x187   : > { %v738_v21 = vadd.f32 %v737_v16, %v3143_v23  ;;  %v739_v24 = vpop.f32.mrb[14].mxu0 }
 0x188   : > { %v940_v25 = vmul.f32 0.01, %v736_v15  ;;  %v740_v26 = vadd.f32 %v739_v24, %v3141_v22  ;;  %v741_v27 = vpop.f32.mrb[15].mxu0  ;;  %1271 = vmatprep.mubr.bf16.mxu1 %v1061_v20  ;;  %vm876_vm12 = vcmp.gt.f32.partialorder %v736_v15, 0.0 }
 0x189   : > { %v941_v28 = vmul.f32 0.01, %v738_v21  ;;  %v742_v29 = vadd.f32 %v741_v27, %v3143_v23  ;;  %1272 = vmatmul.mubr.bf16.gmra.mrb[8].mxu1 %v1060_v14  ;;  %vm877_vm13 = vcmp.gt.f32.partialorder %v738_v21, 0.0 }
 0x18a   : > { %vm878_vm14 = vcmp.gt.f32.partialorder %v740_v26, 0.0  ;;  %v942_v30 = vmul.f32 0.01, %v740_v26  ;;  %v1004_v32 = vsel %vm876_vm12, %v736_v15, %v940_v25 }
 0x18b   : > { %vm879_vm15 = vcmp.gt.f32.partialorder %v742_v29, 0.0  ;;  %v943_v31 = vmul.f32 0.01, %v742_v29  ;;  %v1005_v35 = vsel %vm877_vm13, %v738_v21, %v941_v28 }
 0x18c   : > { %v1006_v33 = vsel %vm878_vm14, %v740_v26, %v942_v30 }
 0x18d   : > { %v745_v34 = vpop.f32.mrb[16].mxu0  ;;  %v1007_v36 = vsel %vm879_vm15, %v742_v29, %v943_v31  ;;  %v1062_v37 = vpack.c.bf16 %v1006_v33, %v1004_v32 }
 0x18e   : > { %v746_v38 = vadd.f32 %v745_v34, %v3141_v22  ;;  %v747_v39 = vpop.f32.mrb[17].mxu0  ;;  %v1063_v40 = vpack.c.bf16 %v1007_v36, %v1005_v35 }
 0x18f   : > { %v748_v41 = vadd.f32 %v747_v39, %v3143_v23  ;;  %v749_v42 = vpop.f32.mrb[18].mxu0 }
 0x190   : > { %v944_v43 = vmul.f32 0.01, %v746_v38  ;;  %v750_v44 = vadd.f32 %v749_v42, %v3141_v22  ;;  %v751_v45 = vpop.f32.mrb[19].mxu0  ;;  %1279 = vmatprep.mubr.bf16.mxu1 %v1063_v40  ;;  %vm880_vm0 = vcmp.gt.f32.partialorder %v746_v38, 0.0 }
 0x191   : > { %v945_v46 = vmul.f32 0.01, %v748_v41  ;;  %v752_v47 = vadd.f32 %v751_v45, %v3143_v23  ;;  %1280 = vmatmul.mubr.bf16.gmra.mrb[12].mxu1 %v1062_v37  ;;  %vm881_vm1 = vcmp.gt.f32.partialorder %v748_v41, 0.0 }
 0x192   : > { %vm882_vm2 = vcmp.gt.f32.partialorder %v750_v44, 0.0  ;;  %v946_v48 = vmul.f32 0.01, %v750_v44  ;;  %v1008_v50 = vsel %vm880_vm0, %v746_v38, %v944_v43 }
 0x193   : > { %vm883_vm3 = vcmp.gt.f32.partialorder %v752_v47, 0.0  ;;  %v947_v49 = vmul.f32 0.01, %v752_v47  ;;  %v1009_v53 = vsel %vm881_vm1, %v748_v41, %v945_v46 }
 0x194   : > { %v1010_v51 = vsel %vm882_vm2, %v750_v44, %v946_v48 }
 0x195   : > { %v755_v52 = vpop.f32.mrb[20].mxu0  ;;  %v1011_v54 = vsel %vm883_vm3, %v752_v47, %v947_v49  ;;  %v1064_v55 = vpack.c.bf16 %v1010_v51, %v1008_v50 }
 0x196   : > { %v756_v56 = vadd.f32 %v755_v52, %v3141_v22  ;;  %v757_v57 = vpop.f32.mrb[21].mxu0  ;;  %v1065_v58 = vpack.c.bf16 %v1011_v54, %v1009_v53 }
 0x197   : > { %v758_v59 = vadd.f32 %v757_v57, %v3143_v23  ;;  %v759_v60 = vpop.f32.mrb[22].mxu0 }
 0x198   : > { %v948_v61 = vmul.f32 0.01, %v756_v56  ;;  %v760_v62 = vadd.f32 %v759_v60, %v3141_v22  ;;  %v761_v63 = vpop.f32.mrb[23].mxu0  ;;  %1287 = vmatprep.mubr.bf16.mxu1 %v1065_v58  ;;  %vm884_vm4 = vcmp.gt.f32.partialorder %v756_v56, 0.0 }
 0x199   : > { %v949_v0 = vmul.f32 0.01, %v758_v59  ;;  %v762_v1 = vadd.f32 %v761_v63, %v3143_v23  ;;  %1288 = vmatmul.mubr.bf16.gmra.mrb[16].mxu1 %v1064_v55  ;;  %vm885_vm5 = vcmp.gt.f32.partialorder %v758_v59, 0.0 }
 0x19a   : > { %vm886_vm6 = vcmp.gt.f32.partialorder %v760_v62, 0.0  ;;  %v950_v2 = vmul.f32 0.01, %v760_v62  ;;  %v1012_v4 = vsel %vm884_vm4, %v756_v56, %v948_v61 }
 0x19b   : > { %vm887_vm7 = vcmp.gt.f32.partialorder %v762_v1, 0.0  ;;  %v951_v3 = vmul.f32 0.01, %v762_v1  ;;  %v1013_v7 = vsel %vm885_vm5, %v758_v59, %v949_v0 }
 0x19c   : > { %v1014_v5 = vsel %vm886_vm6, %v760_v62, %v950_v2 }
 0x19d   : > { %v765_v6 = vpop.f32.mrb[24].mxu0  ;;  %v1015_v8 = vsel %vm887_vm7, %v762_v1, %v951_v3  ;;  %v1066_v9 = vpack.c.bf16 %v1014_v5, %v1012_v4 }
 0x19e   : > { %v766_v10 = vadd.f32 %v765_v6, %v3141_v22  ;;  %v767_v11 = vpop.f32.mrb[25].mxu0  ;;  %v1067_v12 = vpack.c.bf16 %v1015_v8, %v1013_v7 }
 0x19f   : > { %v768_v13 = vadd.f32 %v767_v11, %v3143_v23  ;;  %v769_v14 = vpop.f32.mrb[26].mxu0 }
 0x1a0   : > { %v952_v15 = vmul.f32 0.01, %v766_v10  ;;  %v770_v16 = vadd.f32 %v769_v14, %v3141_v22  ;;  %v771_v20 = vpop.f32.mrb[27].mxu0  ;;  %1295 = vmatprep.mubr.bf16.mxu1 %v1067_v12  ;;  %vm888_vm8 = vcmp.gt.f32.partialorder %v766_v10, 0.0 }
 0x1a1   : > { %v953_v21 = vmul.f32 0.01, %v768_v13  ;;  %v772_v24 = vadd.f32 %v771_v20, %v3143_v23  ;;  %1296 = vmatmul.mubr.bf16.gmra.mrb[20].mxu1 %v1066_v9  ;;  %vm889_vm9 = vcmp.gt.f32.partialorder %v768_v13, 0.0 }
 0x1a2   : > { %vm890_vm10 = vcmp.gt.f32.partialorder %v770_v16, 0.0  ;;  %v954_v25 = vmul.f32 0.01, %v770_v16  ;;  %v1016_v27 = vsel %vm888_vm8, %v766_v10, %v952_v15 }
 0x1a3   : > { %vm891_vm11 = vcmp.gt.f32.partialorder %v772_v24, 0.0  ;;  %v955_v26 = vmul.f32 0.01, %v772_v24  ;;  %v1017_v30 = vsel %vm889_vm9, %v768_v13, %v953_v21 }
 0x1a4   : > { %v1018_v28 = vsel %vm890_vm10, %v770_v16, %v954_v25 }
 0x1a5   : > { %v775_v29 = vpop.f32.mrb[28].mxu0  ;;  %v1019_v31 = vsel %vm891_vm11, %v772_v24, %v955_v26  ;;  %v1068_v32 = vpack.c.bf16 %v1018_v28, %v1016_v27 }
 0x1a6   : > { %v776_v33 = vadd.f32 %v775_v29, %v3141_v22  ;;  %v777_v34 = vpop.f32.mrb[29].mxu0  ;;  %v1069_v35 = vpack.c.bf16 %v1019_v31, %v1017_v30 }
 0x1a7   : > { %v778_v36 = vadd.f32 %v777_v34, %v3143_v23  ;;  %v779_v37 = vpop.f32.mrb[30].mxu0 }
 0x1a8   : > { %v956_v38 = vmul.f32 0.01, %v776_v33  ;;  %v780_v39 = vadd.f32 %v779_v37, %v3141_v22  ;;  %v781_v40 = vpop.f32.mrb[31].mxu0  ;;  %1303 = vmatprep.mubr.bf16.mxu1 %v1069_v35  ;;  %vm892_vm12 = vcmp.gt.f32.partialorder %v776_v33, 0.0 }
 0x1a9   : > { %v957_v41 = vmul.f32 0.01, %v778_v36  ;;  %v782_v42 = vadd.f32 %v781_v40, %v3143_v23  ;;  %1304 = vmatmul.mubr.bf16.gmra.mrb[24].mxu1 %v1068_v32  ;;  %vm893_vm13 = vcmp.gt.f32.partialorder %v778_v36, 0.0 }
 0x1aa   : > { %vm894_vm14 = vcmp.gt.f32.partialorder %v780_v39, 0.0  ;;  %v958_v43 = vmul.f32 0.01, %v780_v39  ;;  %v1020_v45 = vsel %vm892_vm12, %v776_v33, %v956_v38 }
 0x1ab   : > { %vm895_vm15 = vcmp.gt.f32.partialorder %v782_v42, 0.0  ;;  %v959_v44 = vmul.f32 0.01, %v782_v42  ;;  %v1021_v48 = vsel %vm893_vm13, %v778_v36, %v957_v41 }
 0x1ac   : > { %v1022_v46 = vsel %vm894_vm14, %v780_v39, %v958_v43 }
 0x1ad   : > { %v785_v47 = vpop.f32.mrb[32].mxu0  ;;  %v1023_v49 = vsel %vm895_vm15, %v782_v42, %v959_v44  ;;  %v1070_v50 = vpack.c.bf16 %v1022_v46, %v1020_v45 }
 0x1ae   : > { %v786_v51 = vadd.f32 %v785_v47, %v3141_v22  ;;  %v787_v52 = vpop.f32.mrb[33].mxu0  ;;  %v1071_v53 = vpack.c.bf16 %v1023_v49, %v1021_v48 }
 0x1af   : > { %v788_v54 = vadd.f32 %v787_v52, %v3143_v23  ;;  %v789_v55 = vpop.f32.mrb[34].mxu0 }
 0x1b0   : > { %v960_v56 = vmul.f32 0.01, %v786_v51  ;;  %v790_v57 = vadd.f32 %v789_v55, %v3141_v22  ;;  %v791_v58 = vpop.f32.mrb[35].mxu0  ;;  %1311 = vmatprep.mubr.bf16.mxu1 %v1071_v53  ;;  %vm896_vm0 = vcmp.gt.f32.partialorder %v786_v51, 0.0 }
 0x1b1   : > { %v961_v59 = vmul.f32 0.01, %v788_v54  ;;  %v792_v60 = vadd.f32 %v791_v58, %v3143_v23  ;;  %1312 = vmatmul.mubr.bf16.gmra.mrb[28].mxu1 %v1070_v50  ;;  %vm897_vm1 = vcmp.gt.f32.partialorder %v788_v54, 0.0 }
 0x1b2   : > { %vm898_vm2 = vcmp.gt.f32.partialorder %v790_v57, 0.0  ;;  %v962_v61 = vmul.f32 0.01, %v790_v57  ;;  %v1024_v63 = vsel %vm896_vm0, %v786_v51, %v960_v56 }
 0x1b3   : > { %vm899_vm3 = vcmp.gt.f32.partialorder %v792_v60, 0.0  ;;  %v963_v62 = vmul.f32 0.01, %v792_v60  ;;  %v1025_v2 = vsel %vm897_vm1, %v788_v54, %v961_v59 }
 0x1b4   : > { %v1026_v0 = vsel %vm898_vm2, %v790_v57, %v962_v61 }
 0x1b5   : > { %v795_v1 = vpop.f32.mrb[36].mxu0  ;;  %v1027_v3 = vsel %vm899_vm3, %v792_v60, %v963_v62  ;;  %v1072_v4 = vpack.c.bf16 %v1026_v0, %v1024_v63 }
 0x1b6   : > { %v796_v5 = vadd.f32 %v795_v1, %v3141_v22  ;;  %v797_v6 = vpop.f32.mrb[37].mxu0  ;;  %v1073_v7 = vpack.c.bf16 %v1027_v3, %v1025_v2 }
 0x1b7   : > { %v798_v8 = vadd.f32 %v797_v6, %v3143_v23  ;;  %v799_v9 = vpop.f32.mrb[38].mxu0 }
 0x1b8   : > { %v964_v10 = vmul.f32 0.01, %v796_v5  ;;  %v800_v11 = vadd.f32 %v799_v9, %v3141_v22  ;;  %v801_v12 = vpop.f32.mrb[39].mxu0  ;;  %1319 = vmatprep.mubr.bf16.mxu1 %v1073_v7  ;;  %vm900_vm4 = vcmp.gt.f32.partialorder %v796_v5, 0.0 }
 0x1b9   : > { %v965_v13 = vmul.f32 0.01, %v798_v8  ;;  %v802_v14 = vadd.f32 %v801_v12, %v3143_v23  ;;  %1320 = vmatmul.mubr.bf16.gmra.mrb[32].mxu1 %v1072_v4  ;;  %vm901_vm5 = vcmp.gt.f32.partialorder %v798_v8, 0.0  ;;  %v2663_v12 = vld [vmem:[%s3488_s5 + $0x8] sm:$0xff]  }
 0x1ba   : > { %vm902_vm6 = vcmp.gt.f32.partialorder %v800_v11, 0.0  ;;  %v966_v15 = vmul.f32 0.01, %v800_v11  ;;  %v1028_v20 = vsel %vm900_vm4, %v796_v5, %v964_v10  ;;  %2448 = vmatprep.subr.bf16.mxu1 %v2663_v12 }
 0x1bb   : > { %vm903_vm7 = vcmp.gt.f32.partialorder %v802_v14, 0.0  ;;  %v967_v16 = vmul.f32 0.01, %v802_v14  ;;  %v1029_v25 = vsel %vm901_vm5, %v798_v8, %v965_v13  ;;  %2449 = vmatpush3.bf16.msra.mxu1 %v2663_v12 }
 0x1bc   : > { %v1030_v21 = vsel %vm902_vm6, %v800_v11, %v966_v15 }
 0x1bd   : > { %v805_v24 = vpop.f32.mrb[40].mxu0  ;;  %v1031_v26 = vsel %vm903_vm7, %v802_v14, %v967_v16  ;;  %v1074_v27 = vpack.c.bf16 %v1030_v21, %v1028_v20 }
 0x1be   : > { %v806_v28 = vadd.f32 %v805_v24, %v3141_v22  ;;  %v807_v29 = vpop.f32.mrb[41].mxu0  ;;  %v1075_v30 = vpack.c.bf16 %v1031_v26, %v1029_v25 }
 0x1bf   : > { %v808_v31 = vadd.f32 %v807_v29, %v3143_v23  ;;  %v809_v32 = vpop.f32.mrb[42].mxu0  ;;  %v2664_v29 = vld [vmem:[%s3488_s5 + $0x10] sm:$0xff]  }
 0x1c0   : > { %v968_v33 = vmul.f32 0.01, %v806_v28  ;;  %v810_v34 = vadd.f32 %v809_v32, %v3141_v22  ;;  %v811_v35 = vpop.f32.mrb[43].mxu0  ;;  %1327 = vmatprep.mubr.bf16.mxu1 %v1075_v30  ;;  %vm904_vm8 = vcmp.gt.f32.partialorder %v806_v28, 0.0  ;;  %2450 = vmatprep.subr.bf16.mxu1 %v2664_v29 }
 0x1c1   : > { %v969_v36 = vmul.f32 0.01, %v808_v31  ;;  %v812_v37 = vadd.f32 %v811_v35, %v3143_v23  ;;  %1328 = vmatmul.mubr.bf16.gmra.mrb[36].mxu1 %v1074_v27  ;;  %vm905_vm9 = vcmp.gt.f32.partialorder %v808_v31, 0.0 }
 0x1c2   : > { %vm906_vm10 = vcmp.gt.f32.partialorder %v810_v34, 0.0  ;;  %v970_v38 = vmul.f32 0.01, %v810_v34  ;;  %v1032_v40 = vsel %vm904_vm8, %v806_v28, %v968_v33  ;;  %2451 = vmatpush3.bf16.msra.mxu1 %v2664_v29 }
 0x1c3   : > { %vm907_vm11 = vcmp.gt.f32.partialorder %v812_v37, 0.0  ;;  %v971_v39 = vmul.f32 0.01, %v812_v37  ;;  %v1033_v43 = vsel %vm905_vm9, %v808_v31, %v969_v36 }
 0x1c4   : > { %v1034_v41 = vsel %vm906_vm10, %v810_v34, %v970_v38 }
 0x1c5   : > { %v815_v42 = vpop.f32.mrb[44].mxu0  ;;  %v1035_v44 = vsel %vm907_vm11, %v812_v37, %v971_v39  ;;  %v1076_v45 = vpack.c.bf16 %v1034_v41, %v1032_v40  ;;  %v2665_v37 = vld [vmem:[%s3488_s5 + $0x18] sm:$0xff]  }
 0x1c6   : > { %v816_v46 = vadd.f32 %v815_v42, %v3141_v22  ;;  %v817_v47 = vpop.f32.mrb[45].mxu0  ;;  %v1077_v48 = vpack.c.bf16 %v1035_v44, %v1033_v43  ;;  %2452 = vmatprep.subr.bf16.mxu1 %v2665_v37 }
 0x1c7   : > { %v818_v49 = vadd.f32 %v817_v47, %v3143_v23  ;;  %v819_v50 = vpop.f32.mrb[46].mxu0  ;;  %2453 = vmatpush3.bf16.msra.mxu1 %v2665_v37 }
 0x1c8   : > { %v972_v51 = vmul.f32 0.01, %v816_v46  ;;  %v820_v52 = vadd.f32 %v819_v50, %v3141_v22  ;;  %v821_v53 = vpop.f32.mrb[47].mxu0  ;;  %1335 = vmatprep.mubr.bf16.mxu1 %v1077_v48  ;;  %vm908_vm12 = vcmp.gt.f32.partialorder %v816_v46, 0.0 }
 0x1c9   : > { %v973_v54 = vmul.f32 0.01, %v818_v49  ;;  %v822_v55 = vadd.f32 %v821_v53, %v3143_v23  ;;  %1336 = vmatmul.mubr.bf16.gmra.mrb[40].mxu1 %v1076_v45  ;;  %vm909_vm13 = vcmp.gt.f32.partialorder %v818_v49, 0.0 }
 0x1ca   : > { %vm910_vm14 = vcmp.gt.f32.partialorder %v820_v52, 0.0  ;;  %v974_v56 = vmul.f32 0.01, %v820_v52  ;;  %v1036_v58 = vsel %vm908_vm12, %v816_v46, %v972_v51 }
 0x1cb   : > { %vm911_vm15 = vcmp.gt.f32.partialorder %v822_v55, 0.0  ;;  %v975_v57 = vmul.f32 0.01, %v822_v55  ;;  %v1037_v61 = vsel %vm909_vm13, %v818_v49, %v973_v54 }
 0x1cc   : > { %v1038_v59 = vsel %vm910_vm14, %v820_v52, %v974_v56 }
 0x1cd   : > { %v825_v60 = vpop.f32.mrb[48].mxu0  ;;  %v1039_v62 = vsel %vm911_vm15, %v822_v55, %v975_v57  ;;  %v1078_v63 = vpack.c.bf16 %v1038_v59, %v1036_v58 }
 0x1ce   : > { %v826_v0 = vadd.f32 %v825_v60, %v3141_v22  ;;  %v827_v1 = vpop.f32.mrb[49].mxu0  ;;  %v1079_v2 = vpack.c.bf16 %v1039_v62, %v1037_v61 }
 0x1cf   : > { %v828_v3 = vadd.f32 %v827_v1, %v3143_v23  ;;  %v829_v4 = vpop.f32.mrb[50].mxu0 }
 0x1d0   : > { %v976_v5 = vmul.f32 0.01, %v826_v0  ;;  %v830_v6 = vadd.f32 %v829_v4, %v3141_v22  ;;  %v831_v7 = vpop.f32.mrb[51].mxu0  ;;  %1343 = vmatprep.mubr.bf16.mxu1 %v1079_v2  ;;  %vm912_vm0 = vcmp.gt.f32.partialorder %v826_v0, 0.0 }
 0x1d1   : > { %v977_v8 = vmul.f32 0.01, %v828_v3  ;;  %v832_v9 = vadd.f32 %v831_v7, %v3143_v23  ;;  %1344 = vmatmul.mubr.bf16.gmra.mrb[44].mxu1 %v1078_v63  ;;  %vm913_vm1 = vcmp.gt.f32.partialorder %v828_v3, 0.0 }
 0x1d2   : > { %vm914_vm2 = vcmp.gt.f32.partialorder %v830_v6, 0.0  ;;  %v978_v10 = vmul.f32 0.01, %v830_v6  ;;  %v1040_v13 = vsel %vm912_vm0, %v826_v0, %v976_v5 }
 0x1d3   : > { %vm915_vm3 = vcmp.gt.f32.partialorder %v832_v9, 0.0  ;;  %v979_v11 = vmul.f32 0.01, %v832_v9  ;;  %v1041_v16 = vsel %vm913_vm1, %v828_v3, %v977_v8 }
 0x1d4   : > { %v1042_v14 = vsel %vm914_vm2, %v830_v6, %v978_v10  ;;  %vm1535_vm2 = vcmask 523264  }
 0x1d5   : > { %v835_v15 = vpop.f32.mrb[52].mxu0  ;;  %v1043_v20 = vsel %vm915_vm3, %v832_v9, %v979_v11  ;;  %v1080_v21 = vpack.c.bf16 %v1042_v14, %v1040_v13 }
 0x1d6   : > { %v836_v24 = vadd.f32 %v835_v15, %v3141_v22  ;;  %v837_v25 = vpop.f32.mrb[53].mxu0  ;;  %v1081_v26 = vpack.c.bf16 %v1043_v20, %v1041_v16  ;;  %v3224_v16 = vld [vmem:[%s3487_s4] ss:$0 sm:$0xff] }
 0x1d7   : > { %v838_v27 = vadd.f32 %v837_v25, %v3143_v23  ;;  %v839_v28 = vpop.f32.mrb[54].mxu0 }
 0x1d8   : > { %v980_v30 = vmul.f32 0.01, %v836_v24  ;;  %v840_v31 = vadd.f32 %v839_v28, %v3141_v22  ;;  %v841_v32 = vpop.f32.mrb[55].mxu0  ;;  %1351 = vmatprep.mubr.bf16.mxu1 %v1081_v26  ;;  %vm916_vm4 = vcmp.gt.f32.partialorder %v836_v24, 0.0 }
 0x1d9   : > { %v981_v33 = vmul.f32 0.01, %v838_v27  ;;  %v842_v34 = vadd.f32 %v841_v32, %v3143_v23  ;;  %1352 = vmatmul.mubr.bf16.gmra.mrb[48].mxu1 %v1080_v21  ;;  %vm917_vm5 = vcmp.gt.f32.partialorder %v838_v27, 0.0 }
 0x1da   : > { %vm918_vm6 = vcmp.gt.f32.partialorder %v840_v31, 0.0  ;;  %v982_v35 = vmul.f32 0.01, %v840_v31  ;;  %v1044_v38 = vsel %vm916_vm4, %v836_v24, %v980_v30 }
 0x1db   : > { %vm919_vm7 = vcmp.gt.f32.partialorder %v842_v34, 0.0  ;;  %v983_v36 = vmul.f32 0.01, %v842_v34  ;;  %v1045_v41 = vsel %vm917_vm5, %v838_v27, %v981_v33 }
 0x1dc   : > { %v1046_v39 = vsel %vm918_vm6, %v840_v31, %v982_v35 }
 0x1dd   : > { %v845_v40 = vpop.f32.mrb[56].mxu0  ;;  %v1047_v42 = vsel %vm919_vm7, %v842_v34, %v983_v36  ;;  %v1082_v43 = vpack.c.bf16 %v1046_v39, %v1044_v38 }
 0x1de   : > { %v846_v44 = vadd.f32 %v845_v40, %v3141_v22  ;;  %v847_v45 = vpop.f32.mrb[57].mxu0  ;;  %v1083_v46 = vpack.c.bf16 %v1047_v42, %v1045_v41 }
 0x1df   : > { %v848_v47 = vadd.f32 %v847_v45, %v3143_v23  ;;  %v849_v48 = vpop.f32.mrb[58].mxu0 }
 0x1e0   : > { %v984_v49 = vmul.f32 0.01, %v846_v44  ;;  %v850_v50 = vadd.f32 %v849_v48, %v3141_v22  ;;  %v851_v51 = vpop.f32.mrb[59].mxu0  ;;  %1359 = vmatprep.mubr.bf16.mxu1 %v1083_v46  ;;  %vm920_vm8 = vcmp.gt.f32.partialorder %v846_v44, 0.0 }
 0x1e1   : > { %v985_v52 = vmul.f32 0.01, %v848_v47  ;;  %v852_v53 = vadd.f32 %v851_v51, %v3143_v23  ;;  %1360 = vmatmul.mubr.bf16.gmra.mrb[52].mxu1 %v1082_v43  ;;  %vm921_vm9 = vcmp.gt.f32.partialorder %v848_v47, 0.0 }
 0x1e2   : > { %vm922_vm10 = vcmp.gt.f32.partialorder %v850_v50, 0.0  ;;  %v986_v54 = vmul.f32 0.01, %v850_v50  ;;  %v1048_v56 = vsel %vm920_vm8, %v846_v44, %v984_v49 }
 0x1e3   : > { %vm923_vm11 = vcmp.gt.f32.partialorder %v852_v53, 0.0  ;;  %v987_v55 = vmul.f32 0.01, %v852_v53  ;;  %v1049_v59 = vsel %vm921_vm9, %v848_v47, %v985_v52 }
 0x1e4   : > { %v1050_v57 = vsel %vm922_vm10, %v850_v50, %v986_v54 }
 0x1e5   : > { %v855_v58 = vpop.f32.mrb[60].mxu0  ;;  %v1051_v60 = vsel %vm923_vm11, %v852_v53, %v987_v55  ;;  %v1084_v61 = vpack.c.bf16 %v1050_v57, %v1048_v56 }
 0x1e6   : > { %v856_v62 = vadd.f32 %v855_v58, %v3141_v22  ;;  %v857_v63 = vpop.f32.mrb[61].mxu0  ;;  %v1085_v0 = vpack.c.bf16 %v1051_v60, %v1049_v59 }
 0x1e7   : > { %v858_v1 = vadd.f32 %v857_v63, %v3143_v23  ;;  %v859_v2 = vpop.f32.mrb[62].mxu0 }
 0x1e8   : > { %v988_v3 = vmul.f32 0.01, %v856_v62  ;;  %v860_v4 = vadd.f32 %v859_v2, %v3141_v22  ;;  %v861_v5 = vpop.f32.mrb[63].mxu0  ;;  %1367 = vmatprep.mubr.bf16.mxu1 %v1085_v0  ;;  %vm924_vm12 = vcmp.gt.f32.partialorder %v856_v62, 0.0 }
 0x1e9   : > { %v989_v6 = vmul.f32 0.01, %v858_v1  ;;  %v862_v7 = vadd.f32 %v861_v5, %v3143_v23  ;;  %1368 = vmatmul.mubr.bf16.gmra.mrb[56].mxu1 %v1084_v61  ;;  %vm925_vm13 = vcmp.gt.f32.partialorder %v858_v1, 0.0 }
 0x1ea   : > { %vm926_vm14 = vcmp.gt.f32.partialorder %v860_v4, 0.0  ;;  %v990_v8 = vmul.f32 0.01, %v860_v4  ;;  %v1052_v10 = vsel %vm924_vm12, %v856_v62, %v988_v3 }
 0x1eb   : > { %vm927_vm15 = vcmp.gt.f32.partialorder %v862_v7, 0.0  ;;  %v991_v9 = vmul.f32 0.01, %v862_v7  ;;  %v1053_v12 = vsel %vm925_vm13, %v858_v1, %v989_v6 }
 0x1ec   : > { %v1054_v11 = vsel %vm926_vm14, %v860_v4, %v990_v8 }
 0x1ed   : > { %v1055_v13 = vsel %vm927_vm15, %v862_v7, %v991_v9  ;;  %v1086_v14 = vpack.c.bf16 %v1054_v11, %v1052_v10 }
 0x1ee   : > { %v1087_v15 = vpack.c.bf16 %v1055_v13, %v1053_v12 }
 0x1f0   : > { %1375 = vmatprep.mubr.bf16.mxu1 %v1087_v15 }
 0x1f1   : > { %1376 = vmatmul.mubr.bf16.gmra.mrb[60].mxu1 %v1086_v14 }
 0x24c   : > { %v2296_v22 = vpop.f32.mrb[0].mxu1 }
 0x24d   : > { %v2297_v23 = vpop.f32.mrb[1].mxu1 }
 0x24e   : > { %v2298_v20 = vadd.f32 %v2297_v23, %v2296_v22  ;;  %v2299_v21 = vpop.f32.mrb[2].mxu1 }
 0x24f   : > { %v2300_v24 = vpop.f32.mrb[3].mxu1 }
 0x250   : > { %v1258_v25 = vadd.f32 %v2298_v20, %v3224_v16  ;;  %v2301_v26 = vadd.f32 %v2300_v24, %v2299_v21 }
 0x252   : > { %v1416_v27 = vmul.f32 0.01, %v1258_v25  ;;  %v1261_v28 = vadd.f32 %v2301_v26, %v3224_v16  ;;  %vm1384_vm0 = vcmp.gt.f32.partialorder %v1258_v25, 0.0 }
 0x254   : > { %vm1385_vm1 = vcmp.gt.f32.partialorder %v1261_v28, 0.0  ;;  %v1417_v29 = vmul.f32 0.01, %v1261_v28  ;;  %v2302_v30 = vpop.f32.mrb[4].mxu1  ;;  %v1448_v32 = vsel %vm1384_vm0, %v1258_v25, %v1416_v27 }
 0x255   : > { %v2303_v31 = vpop.f32.mrb[5].mxu1 }
 0x256   : > { %v1449_v33 = vsel %vm1385_vm1, %v1261_v28, %v1417_v29  ;;  %v2304_v34 = vadd.f32 %v2303_v31, %v2302_v30  ;;  %v2305_v35 = vpop.f32.mrb[6].mxu1 }
 0x257   : > { %v2306_v36 = vpop.f32.mrb[7].mxu1  ;;  %v1480_v37 = vpack.c.bf16 %v1449_v33, %v1448_v32 }
 0x258   : > { %v1266_v38 = vadd.f32 %v2304_v34, %v3224_v16  ;;  %v2307_v39 = vadd.f32 %v2306_v36, %v2305_v35 }
 0x259   : > { %2454 = vmatprep.mubr.msk.bf16.mxu1 %vm1535_vm2, %v1480_v37 }
 0x25a   : > { %v1418_v40 = vmul.f32 0.01, %v1266_v38  ;;  %v1269_v41 = vadd.f32 %v2307_v39, %v3224_v16  ;;  %vm1386_vm3 = vcmp.gt.f32.partialorder %v1266_v38, 0.0 }
 0x25c   : > { %vm1387_vm4 = vcmp.gt.f32.partialorder %v1269_v41, 0.0  ;;  %v1419_v42 = vmul.f32 0.01, %v1269_v41  ;;  %v2308_v43 = vpop.f32.mrb[8].mxu1  ;;  %v1450_v45 = vsel %vm1386_vm3, %v1266_v38, %v1418_v40 }
 0x25d   : > { %v2309_v44 = vpop.f32.mrb[9].mxu1 }
 0x25e   : > { %v1451_v46 = vsel %vm1387_vm4, %v1269_v41, %v1419_v42  ;;  %v2310_v47 = vadd.f32 %v2309_v44, %v2308_v43  ;;  %v2311_v48 = vpop.f32.mrb[10].mxu1 }
 0x25f   : > { %v1481_v49 = vpack.c.bf16 %v1451_v46, %v1450_v45  ;;  %v2312_v50 = vpop.f32.mrb[11].mxu1 }
 0x260   : > { %v1274_v51 = vadd.f32 %v2310_v47, %v3224_v16  ;;  %v2313_v52 = vadd.f32 %v2312_v50, %v2311_v48 }
 0x261   : > { %2455 = vmatmul.mubr.msk.bf16.vlgmr.msra.gmra.mrb[64].mxu1 %vm1535_vm2, %v1481_v49 }
 0x262   : > { %v1420_v53 = vmul.f32 0.01, %v1274_v51  ;;  %v1277_v54 = vadd.f32 %v2313_v52, %v3224_v16  ;;  %vm1388_vm5 = vcmp.gt.f32.partialorder %v1274_v51, 0.0 }
 0x264   : > { %vm1389_vm6 = vcmp.gt.f32.partialorder %v1277_v54, 0.0  ;;  %v1421_v55 = vmul.f32 0.01, %v1277_v54  ;;  %v2314_v56 = vpop.f32.mrb[12].mxu1  ;;  %v1452_v58 = vsel %vm1388_vm5, %v1274_v51, %v1420_v53 }
 0x265   : > { %v2315_v57 = vpop.f32.mrb[13].mxu1 }
 0x266   : > { %v1453_v59 = vsel %vm1389_vm6, %v1277_v54, %v1421_v55  ;;  %v2316_v60 = vadd.f32 %v2315_v57, %v2314_v56  ;;  %v2317_v61 = vpop.f32.mrb[14].mxu1 }
 0x267   : > { %v2318_v62 = vpop.f32.mrb[15].mxu1  ;;  %v1482_v63 = vpack.c.bf16 %v1453_v59, %v1452_v58 }
 0x268   : > { %v1282_v0 = vadd.f32 %v2316_v60, %v3224_v16  ;;  %v2319_v1 = vadd.f32 %v2318_v62, %v2317_v61 }
 0x269   : > { %2458 = vmatprep.mubr.msk.bf16.mxu1 %vm1535_vm2, %v1482_v63 }
 0x26a   : > { %v1422_v2 = vmul.f32 0.01, %v1282_v0  ;;  %v1285_v3 = vadd.f32 %v2319_v1, %v3224_v16  ;;  %vm1390_vm7 = vcmp.gt.f32.partialorder %v1282_v0, 0.0 }
 0x26c   : > { %vm1391_vm8 = vcmp.gt.f32.partialorder %v1285_v3, 0.0  ;;  %v1423_v4 = vmul.f32 0.01, %v1285_v3  ;;  %v2320_v5 = vpop.f32.mrb[16].mxu1  ;;  %v1454_v7 = vsel %vm1390_vm7, %v1282_v0, %v1422_v2 }
 0x26d   : > { %v2321_v6 = vpop.f32.mrb[17].mxu1 }
 0x26e   : > { %v1455_v8 = vsel %vm1391_vm8, %v1285_v3, %v1423_v4  ;;  %v2322_v9 = vadd.f32 %v2321_v6, %v2320_v5  ;;  %v2323_v10 = vpop.f32.mrb[18].mxu1 }
 0x26f   : > { %v2324_v11 = vpop.f32.mrb[19].mxu1  ;;  %v1483_v12 = vpack.c.bf16 %v1455_v8, %v1454_v7 }
 0x270   : > { %v1290_v13 = vadd.f32 %v2322_v9, %v3224_v16  ;;  %v2325_v14 = vadd.f32 %v2324_v11, %v2323_v10 }
 0x271   : > { %2459 = vmatmul.mubr.msk.bf16.gmra.mrb[68].mxu1 %vm1535_vm2, %v1483_v12 }
 0x272   : > { %v1424_v15 = vmul.f32 0.01, %v1290_v13  ;;  %v1293_v22 = vadd.f32 %v2325_v14, %v3224_v16  ;;  %vm1392_vm9 = vcmp.gt.f32.partialorder %v1290_v13, 0.0 }
 0x274   : > { %vm1393_vm10 = vcmp.gt.f32.partialorder %v1293_v22, 0.0  ;;  %v1425_v23 = vmul.f32 0.01, %v1293_v22  ;;  %v2326_v20 = vpop.f32.mrb[20].mxu1  ;;  %v1456_v24 = vsel %vm1392_vm9, %v1290_v13, %v1424_v15 }
 0x275   : > { %v2327_v21 = vpop.f32.mrb[21].mxu1 }
 0x276   : > { %v1457_v25 = vsel %vm1393_vm10, %v1293_v22, %v1425_v23  ;;  %v2328_v26 = vadd.f32 %v2327_v21, %v2326_v20  ;;  %v2329_v27 = vpop.f32.mrb[22].mxu1 }
 0x277   : > { %v2330_v28 = vpop.f32.mrb[23].mxu1  ;;  %v1484_v29 = vpack.c.bf16 %v1457_v25, %v1456_v24 }
 0x278   : > { %v1298_v30 = vadd.f32 %v2328_v26, %v3224_v16  ;;  %v2331_v31 = vadd.f32 %v2330_v28, %v2329_v27 }
 0x279   : > { %2462 = vmatprep.mubr.msk.bf16.mxu1 %vm1535_vm2, %v1484_v29 }
 0x27a   : > { %v1426_v32 = vmul.f32 0.01, %v1298_v30  ;;  %v1301_v33 = vadd.f32 %v2331_v31, %v3224_v16  ;;  %vm1394_vm11 = vcmp.gt.f32.partialorder %v1298_v30, 0.0 }
 0x27c   : > { %vm1395_vm12 = vcmp.gt.f32.partialorder %v1301_v33, 0.0  ;;  %v1427_v34 = vmul.f32 0.01, %v1301_v33  ;;  %v2332_v35 = vpop.f32.mrb[24].mxu1  ;;  %v1458_v37 = vsel %vm1394_vm11, %v1298_v30, %v1426_v32 }
 0x27d   : > { %v2333_v36 = vpop.f32.mrb[25].mxu1 }
 0x27e   : > { %v1459_v38 = vsel %vm1395_vm12, %v1301_v33, %v1427_v34  ;;  %v2334_v39 = vadd.f32 %v2333_v36, %v2332_v35  ;;  %v2335_v40 = vpop.f32.mrb[26].mxu1 }
 0x27f   : > { %v2336_v41 = vpop.f32.mrb[27].mxu1  ;;  %v1485_v42 = vpack.c.bf16 %v1459_v38, %v1458_v37 }
 0x280   : > { %v1306_v43 = vadd.f32 %v2334_v39, %v3224_v16  ;;  %v2337_v44 = vadd.f32 %v2336_v41, %v2335_v40 }
 0x281   : > { %2463 = vmatmul.mubr.msk.bf16.gmra.mrb[72].mxu1 %vm1535_vm2, %v1485_v42 }
 0x282   : > { %v1428_v45 = vmul.f32 0.01, %v1306_v43  ;;  %v1309_v46 = vadd.f32 %v2337_v44, %v3224_v16  ;;  %vm1396_vm13 = vcmp.gt.f32.partialorder %v1306_v43, 0.0 }
 0x284   : > { %vm1397_vm14 = vcmp.gt.f32.partialorder %v1309_v46, 0.0  ;;  %v1429_v47 = vmul.f32 0.01, %v1309_v46  ;;  %v2338_v48 = vpop.f32.mrb[28].mxu1  ;;  %v1460_v50 = vsel %vm1396_vm13, %v1306_v43, %v1428_v45 }
 0x285   : > { %v2339_v49 = vpop.f32.mrb[29].mxu1 }
 0x286   : > { %v1461_v51 = vsel %vm1397_vm14, %v1309_v46, %v1429_v47  ;;  %v2340_v52 = vadd.f32 %v2339_v49, %v2338_v48  ;;  %v2341_v53 = vpop.f32.mrb[30].mxu1 }
 0x287   : > { %v2342_v54 = vpop.f32.mrb[31].mxu1  ;;  %v1486_v55 = vpack.c.bf16 %v1461_v51, %v1460_v50 }
 0x288   : > { %v1314_v56 = vadd.f32 %v2340_v52, %v3224_v16  ;;  %v2343_v57 = vadd.f32 %v2342_v54, %v2341_v53 }
 0x289   : > { %2466 = vmatprep.mubr.msk.bf16.mxu1 %vm1535_vm2, %v1486_v55 }
 0x28a   : > { %v1430_v58 = vmul.f32 0.01, %v1314_v56  ;;  %v1317_v59 = vadd.f32 %v2343_v57, %v3224_v16  ;;  %vm1398_vm15 = vcmp.gt.f32.partialorder %v1314_v56, 0.0 }
 0x28c   : > { %vm1399_vm0 = vcmp.gt.f32.partialorder %v1317_v59, 0.0  ;;  %v1431_v60 = vmul.f32 0.01, %v1317_v59  ;;  %v2344_v61 = vpop.f32.mrb[32].mxu1  ;;  %v1462_v63 = vsel %vm1398_vm15, %v1314_v56, %v1430_v58 }
 0x28d   : > { %v2345_v62 = vpop.f32.mrb[33].mxu1 }
 0x28e   : > { %v1463_v0 = vsel %vm1399_vm0, %v1317_v59, %v1431_v60  ;;  %v2346_v1 = vadd.f32 %v2345_v62, %v2344_v61  ;;  %v2347_v2 = vpop.f32.mrb[34].mxu1 }
 0x28f   : > { %v2348_v3 = vpop.f32.mrb[35].mxu1  ;;  %v1487_v4 = vpack.c.bf16 %v1463_v0, %v1462_v63 }
 0x290   : > { %v1322_v5 = vadd.f32 %v2346_v1, %v3224_v16  ;;  %v2349_v6 = vadd.f32 %v2348_v3, %v2347_v2 }
 0x291   : > { %2467 = vmatmul.mubr.msk.bf16.gmra.mrb[76].mxu1 %vm1535_vm2, %v1487_v4 }
 0x292   : > { %v1432_v7 = vmul.f32 0.01, %v1322_v5  ;;  %v1325_v8 = vadd.f32 %v2349_v6, %v3224_v16  ;;  %vm1400_vm1 = vcmp.gt.f32.partialorder %v1322_v5, 0.0 }
 0x294   : > { %vm1401_vm3 = vcmp.gt.f32.partialorder %v1325_v8, 0.0  ;;  %v1433_v9 = vmul.f32 0.01, %v1325_v8  ;;  %v2350_v10 = vpop.f32.mrb[36].mxu1  ;;  %v1464_v12 = vsel %vm1400_vm1, %v1322_v5, %v1432_v7 }
 0x295   : > { %v2351_v11 = vpop.f32.mrb[37].mxu1 }
 0x296   : > { %v1465_v13 = vsel %vm1401_vm3, %v1325_v8, %v1433_v9  ;;  %v2352_v14 = vadd.f32 %v2351_v11, %v2350_v10  ;;  %v2353_v15 = vpop.f32.mrb[38].mxu1 }
 0x297   : > { %v2354_v22 = vpop.f32.mrb[39].mxu1  ;;  %v1488_v23 = vpack.c.bf16 %v1465_v13, %v1464_v12 }
 0x298   : > { %v1330_v20 = vadd.f32 %v2352_v14, %v3224_v16  ;;  %v2355_v21 = vadd.f32 %v2354_v22, %v2353_v15 }
 0x299   : > { %2470 = vmatprep.mubr.msk.bf16.mxu1 %vm1535_vm2, %v1488_v23 }
 0x29a   : > { %v1434_v24 = vmul.f32 0.01, %v1330_v20  ;;  %v1333_v25 = vadd.f32 %v2355_v21, %v3224_v16  ;;  %vm1402_vm4 = vcmp.gt.f32.partialorder %v1330_v20, 0.0 }
 0x29c   : > { %vm1403_vm5 = vcmp.gt.f32.partialorder %v1333_v25, 0.0  ;;  %v1435_v26 = vmul.f32 0.01, %v1333_v25  ;;  %v2356_v27 = vpop.f32.mrb[40].mxu1  ;;  %v1466_v29 = vsel %vm1402_vm4, %v1330_v20, %v1434_v24 }
 0x29d   : > { %v2357_v28 = vpop.f32.mrb[41].mxu1 }
 0x29e   : > { %v1467_v30 = vsel %vm1403_vm5, %v1333_v25, %v1435_v26  ;;  %v2358_v31 = vadd.f32 %v2357_v28, %v2356_v27  ;;  %v2359_v32 = vpop.f32.mrb[42].mxu1 }
 0x29f   : > { %v1489_v33 = vpack.c.bf16 %v1467_v30, %v1466_v29  ;;  %v2360_v34 = vpop.f32.mrb[43].mxu1 }
 0x2a0   : > { %v1338_v35 = vadd.f32 %v2358_v31, %v3224_v16  ;;  %v2361_v36 = vadd.f32 %v2360_v34, %v2359_v32 }
 0x2a1   : > { %2471 = vmatmul.mubr.msk.bf16.gmra.mrb[80].mxu1 %vm1535_vm2, %v1489_v33 }
 0x2a2   : > { %v1436_v37 = vmul.f32 0.01, %v1338_v35  ;;  %v1341_v38 = vadd.f32 %v2361_v36, %v3224_v16  ;;  %vm1404_vm6 = vcmp.gt.f32.partialorder %v1338_v35, 0.0 }
 0x2a4   : > { %vm1405_vm7 = vcmp.gt.f32.partialorder %v1341_v38, 0.0  ;;  %v1437_v39 = vmul.f32 0.01, %v1341_v38  ;;  %v2362_v40 = vpop.f32.mrb[44].mxu1  ;;  %v1468_v42 = vsel %vm1404_vm6, %v1338_v35, %v1436_v37 }
 0x2a5   : > { %v2363_v41 = vpop.f32.mrb[45].mxu1 }
 0x2a6   : > { %v1469_v43 = vsel %vm1405_vm7, %v1341_v38, %v1437_v39  ;;  %v2364_v44 = vadd.f32 %v2363_v41, %v2362_v40  ;;  %v2365_v45 = vpop.f32.mrb[46].mxu1 }
 0x2a7   : > { %v2366_v46 = vpop.f32.mrb[47].mxu1  ;;  %v1490_v47 = vpack.c.bf16 %v1469_v43, %v1468_v42 }
 0x2a8   : > { %v1346_v48 = vadd.f32 %v2364_v44, %v3224_v16  ;;  %v2367_v49 = vadd.f32 %v2366_v46, %v2365_v45 }
 0x2a9   : > { %2474 = vmatprep.mubr.msk.bf16.mxu1 %vm1535_vm2, %v1490_v47 }
 0x2aa   : > { %v1438_v50 = vmul.f32 0.01, %v1346_v48  ;;  %v1349_v51 = vadd.f32 %v2367_v49, %v3224_v16  ;;  %vm1406_vm8 = vcmp.gt.f32.partialorder %v1346_v48, 0.0 }
 0x2ac   : > { %vm1407_vm9 = vcmp.gt.f32.partialorder %v1349_v51, 0.0  ;;  %v1439_v52 = vmul.f32 0.01, %v1349_v51  ;;  %v2368_v53 = vpop.f32.mrb[48].mxu1  ;;  %v1470_v55 = vsel %vm1406_vm8, %v1346_v48, %v1438_v50  ;;  %v3277_v48 = vld [vmem:[%s3489_s6] ss:$0 sm:$0xff] }
 0x2ad   : > { %v2369_v54 = vpop.f32.mrb[49].mxu1 }
 0x2ae   : > { %v1471_v56 = vsel %vm1407_vm9, %v1349_v51, %v1439_v52  ;;  %v2370_v57 = vadd.f32 %v2369_v54, %v2368_v53  ;;  %v2371_v58 = vpop.f32.mrb[50].mxu1 }
 0x2af   : > { %v1491_v59 = vpack.c.bf16 %v1471_v56, %v1470_v55  ;;  %v2372_v60 = vpop.f32.mrb[51].mxu1 }
 0x2b0   : > { %v1354_v61 = vadd.f32 %v2370_v57, %v3224_v16  ;;  %v2373_v62 = vadd.f32 %v2372_v60, %v2371_v58  ;;  %v3286_v58 = vld [vmem:[%s3490_s7] sm:$0xff] }
 0x2b1   : > { %2475 = vmatmul.mubr.msk.bf16.gmra.mrb[84].mxu1 %vm1535_vm2, %v1491_v59 }
 0x2b2   : > { %v1440_v63 = vmul.f32 0.01, %v1354_v61  ;;  %v1357_v0 = vadd.f32 %v2373_v62, %v3224_v16  ;;  %vm1408_vm10 = vcmp.gt.f32.partialorder %v1354_v61, 0.0 }
 0x2b4   : > { %vm1409_vm11 = vcmp.gt.f32.partialorder %v1357_v0, 0.0  ;;  %v1441_v1 = vmul.f32 0.01, %v1357_v0  ;;  %v2374_v2 = vpop.f32.mrb[52].mxu1  ;;  %v1472_v4 = vsel %vm1408_vm10, %v1354_v61, %v1440_v63 }
 0x2b5   : > { %v2375_v3 = vpop.f32.mrb[53].mxu1 }
 0x2b6   : > { %v1473_v5 = vsel %vm1409_vm11, %v1357_v0, %v1441_v1  ;;  %v2376_v6 = vadd.f32 %v2375_v3, %v2374_v2  ;;  %v2377_v7 = vpop.f32.mrb[54].mxu1  ;;  %v2013_v3 = vld [vmem:[#allocation2] sm:$0x1] }
 0x2b7   : > { %v2378_v8 = vpop.f32.mrb[55].mxu1  ;;  %v1492_v9 = vpack.c.bf16 %v1473_v5, %v1472_v4  ;;  %v2810_v4 = vmov 0  }
 0x2b8   : > { %v1362_v10 = vadd.f32 %v2376_v6, %v3224_v16  ;;  %v2379_v11 = vadd.f32 %v2378_v8, %v2377_v7  ;;  %2597 = vset.pattern.permute.xlu0 %v2810_v4 }
 0x2b9   : > { %2478 = vmatprep.mubr.msk.bf16.mxu1 %vm1535_vm2, %v1492_v9  ;;  %2016 = vperm.xlu0 %2597, %v2013_v3  }
 0x2ba   : > { %v1442_v12 = vmul.f32 0.01, %v1362_v10  ;;  %v1365_v13 = vadd.f32 %v2379_v11, %v3224_v16  ;;  %vm1410_vm12 = vcmp.gt.f32.partialorder %v1362_v10, 0.0 }
 0x2bc   : > { %vm1411_vm13 = vcmp.gt.f32.partialorder %v1365_v13, 0.0  ;;  %v1443_v14 = vmul.f32 0.01, %v1365_v13  ;;  %v2380_v15 = vpop.f32.mrb[56].mxu1  ;;  %v1474_v23 = vsel %vm1410_vm12, %v1362_v10, %v1442_v12 }
 0x2bd   : > { %v2381_v22 = vpop.f32.mrb[57].mxu1 }
 0x2be   : > { %v1475_v20 = vsel %vm1411_vm13, %v1365_v13, %v1443_v14  ;;  %v2382_v21 = vadd.f32 %v2381_v22, %v2380_v15  ;;  %v2383_v24 = vpop.f32.mrb[58].mxu1 }
 0x2bf   : > { %v1493_v25 = vpack.c.bf16 %v1475_v20, %v1474_v23  ;;  %v2384_v26 = vpop.f32.mrb[59].mxu1 }
 0x2c0   : > { %v1370_v27 = vadd.f32 %v2382_v21, %v3224_v16  ;;  %v2385_v28 = vadd.f32 %v2384_v26, %v2383_v24 }
 0x2c1   : > { %2479 = vmatmul.mubr.msk.bf16.gmra.mrb[88].mxu1 %vm1535_vm2, %v1493_v25 }
 0x2c2   : > { %v1444_v29 = vmul.f32 0.01, %v1370_v27  ;;  %v1373_v30 = vadd.f32 %v2385_v28, %v3224_v16  ;;  %vm1412_vm14 = vcmp.gt.f32.partialorder %v1370_v27, 0.0 }
 0x2c4   : > { %vm1413_vm15 = vcmp.gt.f32.partialorder %v1373_v30, 0.0  ;;  %v1445_v31 = vmul.f32 0.01, %v1373_v30  ;;  %v2386_v32 = vpop.f32.mrb[60].mxu1  ;;  %v1476_v34 = vsel %vm1412_vm14, %v1370_v27, %v1444_v29 }
 0x2c5   : > { %v2387_v33 = vpop.f32.mrb[61].mxu1 }
 0x2c6   : > { %v1477_v35 = vsel %vm1413_vm15, %v1373_v30, %v1445_v31  ;;  %v2388_v36 = vadd.f32 %v2387_v33, %v2386_v32  ;;  %v2389_v37 = vpop.f32.mrb[62].mxu1 }
 0x2c7   : > { %v2390_v38 = vpop.f32.mrb[63].mxu1  ;;  %v1494_v39 = vpack.c.bf16 %v1477_v35, %v1476_v34 }
 0x2c8   : > { %v1378_v40 = vadd.f32 %v2388_v36, %v3224_v16  ;;  %v2391_v41 = vadd.f32 %v2390_v38, %v2389_v37 }
 0x2c9   : > { %2482 = vmatprep.mubr.msk.bf16.mxu1 %vm1535_vm2, %v1494_v39 }
 0x2ca   : > { %v1446_v42 = vmul.f32 0.01, %v1378_v40  ;;  %v1381_v43 = vadd.f32 %v2391_v41, %v3224_v16  ;;  %vm1414_vm0 = vcmp.gt.f32.partialorder %v1378_v40, 0.0 }
 0x2cc   : > { %vm1415_vm1 = vcmp.gt.f32.partialorder %v1381_v43, 0.0  ;;  %v1447_v44 = vmul.f32 0.01, %v1381_v43  ;;  %v1478_v45 = vsel %vm1414_vm0, %v1378_v40, %v1446_v42 }
 0x2ce   : > { %v1479_v46 = vsel %vm1415_vm1, %v1381_v43, %v1447_v44 }
 0x2cf   : > { %v1495_v47 = vpack.c.bf16 %v1479_v46, %v1478_v45 }
 0x2d1   : > { %2483 = vmatmul.mubr.msk.bf16.gmra.mrb[92].mxu1 %vm1535_vm2, %v1495_v47  ;;  %vm1842_vm2 = vcmask 130048  }
 0x2d2   : > { %2444 = vmatprep.mubr.msk.f32.mxu0 %vm1842_vm2, %v3286_v58 }
 0x334   : > { %v2456_v49 = vpop.f32.mrb[64].mxu1 }
 0x335   : > { %v1627_v50 = vadd.f32 %v2456_v49, %v3277_v48  ;;  %v1618_v51 = vpop.f32.mrb[65].mxu1 }
 0x336   : > { %v1619_v52 = vadd.f32 %v3277_v48, %v1618_v51  ;;  %v2457_v16 = vpop.f32.mrb[66].mxu1 }
 0x337   : > { %v1779_v53 = vmul.f32 0.01, %v1627_v50  ;;  %v1630_v54 = vadd.f32 %v2457_v16, %v3277_v48  ;;  %v1621_v55 = vpop.f32.mrb[67].mxu1  ;;  %vm1747_vm3 = vcmp.gt.f32.partialorder %v1627_v50, 0.0 }
 0x338   : > { %v1777_v56 = vmul.f32 0.01, %v1619_v52  ;;  %v1622_v57 = vadd.f32 %v3277_v48, %v1621_v55  ;;  %vm1745_vm4 = vcmp.gt.f32.partialorder %v1619_v52, 0.0 }
 0x339   : > { %vm1748_vm5 = vcmp.gt.f32.partialorder %v1630_v54, 0.0  ;;  %v1780_v59 = vmul.f32 0.01, %v1630_v54  ;;  %v3290_v61 = vsel %vm1747_vm3, %v1627_v50, %v1779_v53 }
 0x33a   : > { %vm1746_vm6 = vcmp.gt.f32.partialorder %v1622_v57, 0.0  ;;  %v1778_v60 = vmul.f32 0.01, %v1622_v57  ;;  %v3294_v63 = vsel %vm1745_vm4, %v1619_v52, %v1777_v56 }
 0x33b   : > { %v3292_v62 = vsel %vm1748_vm5, %v1630_v54, %v1780_v59 }
 0x33c   : > { %v2495_v0 = vpack.c.bf16 %v3292_v62, %v3290_v61  ;;  %v3298_v1 = vsel %vm1746_vm6, %v1622_v57, %v1778_v60 }
 0x33d   : > { %v2489_v2 = vpack.c.bf16 %v3298_v1, %v3294_v63 }
 0x344   : > { %v2460_v5 = vpop.f32.mrb[68].mxu1 }
 0x345   : > { %v1643_v6 = vadd.f32 %v2460_v5, %v3277_v48  ;;  %v1634_v7 = vpop.f32.mrb[69].mxu1 }
 0x346   : > { %v1635_v8 = vadd.f32 %v3277_v48, %v1634_v7  ;;  %v2461_v9 = vpop.f32.mrb[70].mxu1 }
 0x347   : > { %v1783_v10 = vmul.f32 0.01, %v1643_v6  ;;  %v1646_v11 = vadd.f32 %v2461_v9, %v3277_v48  ;;  %v1637_v12 = vpop.f32.mrb[71].mxu1  ;;  %vm1751_vm7 = vcmp.gt.f32.partialorder %v1643_v6, 0.0 }
 0x348   : > { %v1781_v13 = vmul.f32 0.01, %v1635_v8  ;;  %v1638_v14 = vadd.f32 %v3277_v48, %v1637_v12  ;;  %vm1749_vm8 = vcmp.gt.f32.partialorder %v1635_v8, 0.0 }
 0x349   : > { %vm1752_vm9 = vcmp.gt.f32.partialorder %v1646_v11, 0.0  ;;  %v1784_v15 = vmul.f32 0.01, %v1646_v11  ;;  %v3306_v23 = vsel %vm1751_vm7, %v1643_v6, %v1783_v10 }
 0x34a   : > { %vm1750_vm10 = vcmp.gt.f32.partialorder %v1638_v14, 0.0  ;;  %v1782_v22 = vmul.f32 0.01, %v1638_v14  ;;  %v3310_v21 = vsel %vm1749_vm8, %v1635_v8, %v1781_v13  ;;  %vm3356_vm8 = vmpackc.low %vm1842_vm2, %vm1842_vm2 }
 0x34b   : > { %v3308_v20 = vsel %vm1752_vm9, %v1646_v11, %v1784_v15 }
 0x34c   : > { %v2507_v24 = vpack.c.bf16 %v3308_v20, %v3306_v23  ;;  %v3314_v25 = vsel %vm1750_vm10, %v1638_v14, %v1782_v22 }
 0x34d   : > { %v2501_v26 = vpack.c.bf16 %v3314_v25, %v3310_v21 }
 0x354   : > { %v2464_v27 = vpop.f32.mrb[72].mxu1 }
 0x355   : > { %v1659_v28 = vadd.f32 %v2464_v27, %v3277_v48  ;;  %v1650_v29 = vpop.f32.mrb[73].mxu1 }
 0x356   : > { %v1651_v30 = vadd.f32 %v3277_v48, %v1650_v29  ;;  %v2465_v31 = vpop.f32.mrb[74].mxu1 }
 0x357   : > { %v1787_v32 = vmul.f32 0.01, %v1659_v28  ;;  %v1662_v33 = vadd.f32 %v2465_v31, %v3277_v48  ;;  %v1653_v34 = vpop.f32.mrb[75].mxu1  ;;  %vm1755_vm11 = vcmp.gt.f32.partialorder %v1659_v28, 0.0 }
 0x358   : > { %v1785_v35 = vmul.f32 0.01, %v1651_v30  ;;  %v1654_v36 = vadd.f32 %v3277_v48, %v1653_v34  ;;  %vm1753_vm12 = vcmp.gt.f32.partialorder %v1651_v30, 0.0 }
 0x359   : > { %vm1756_vm13 = vcmp.gt.f32.partialorder %v1662_v33, 0.0  ;;  %v1788_v37 = vmul.f32 0.01, %v1662_v33  ;;  %v3322_v39 = vsel %vm1755_vm11, %v1659_v28, %v1787_v32 }
 0x35a   : > { %vm1754_vm14 = vcmp.gt.f32.partialorder %v1654_v36, 0.0  ;;  %v1786_v38 = vmul.f32 0.01, %v1654_v36  ;;  %v3326_v41 = vsel %vm1753_vm12, %v1651_v30, %v1785_v35 }
 0x35b   : > { %v3324_v40 = vsel %vm1756_vm13, %v1662_v33, %v1788_v37 }
 0x35c   : > { %v2519_v42 = vpack.c.bf16 %v3324_v40, %v3322_v39  ;;  %v3330_v43 = vsel %vm1754_vm14, %v1654_v36, %v1786_v38 }
 0x35d   : > { %v2513_v44 = vpack.c.bf16 %v3330_v43, %v3326_v41 }
 0x364   : > { %v2468_v45 = vpop.f32.mrb[76].mxu1 }
 0x365   : > { %v1675_v46 = vadd.f32 %v2468_v45, %v3277_v48  ;;  %v1666_v47 = vpop.f32.mrb[77].mxu1 }
 0x366   : > { %v1667_v49 = vadd.f32 %v3277_v48, %v1666_v47  ;;  %v2469_v50 = vpop.f32.mrb[78].mxu1 }
 0x367   : > { %v1791_v51 = vmul.f32 0.01, %v1675_v46  ;;  %v1678_v52 = vadd.f32 %v2469_v50, %v3277_v48  ;;  %v1669_v16 = vpop.f32.mrb[79].mxu1  ;;  %vm1759_vm15 = vcmp.gt.f32.partialorder %v1675_v46, 0.0 }
 0x368   : > { %v1789_v53 = vmul.f32 0.01, %v1667_v49  ;;  %v1670_v54 = vadd.f32 %v3277_v48, %v1669_v16  ;;  %vm1757_vm0 = vcmp.gt.f32.partialorder %v1667_v49, 0.0 }
 0x369   : > { %vm1760_vm1 = vcmp.gt.f32.partialorder %v1678_v52, 0.0  ;;  %v1792_v55 = vmul.f32 0.01, %v1678_v52  ;;  %v3338_v57 = vsel %vm1759_vm15, %v1675_v46, %v1791_v51 }
 0x36a   : > { %vm1758_vm3 = vcmp.gt.f32.partialorder %v1670_v54, 0.0  ;;  %v1790_v56 = vmul.f32 0.01, %v1670_v54  ;;  %v3342_v60 = vsel %vm1757_vm0, %v1667_v49, %v1789_v53 }
 0x36b   : > { %v3340_v59 = vsel %vm1760_vm1, %v1678_v52, %v1792_v55 }
 0x36c   : > { %v2531_v3 = vpack.c.bf16 %v3340_v59, %v3338_v57  ;;  %v3346_v4 = vsel %vm1758_vm3, %v1670_v54, %v1790_v56 }
 0x36d   : > { %v2525_v5 = vpack.c.bf16 %v3346_v4, %v3342_v60 }
 0x374   : > { %v2472_v6 = vpop.f32.mrb[80].mxu1 }
 0x375   : > { %v1691_v7 = vadd.f32 %v2472_v6, %v3277_v48  ;;  %v1682_v8 = vpop.f32.mrb[81].mxu1 }
 0x376   : > { %v1683_v9 = vadd.f32 %v3277_v48, %v1682_v8  ;;  %v2473_v10 = vpop.f32.mrb[82].mxu1 }
 0x377   : > { %v1795_v11 = vmul.f32 0.01, %v1691_v7  ;;  %v1694_v12 = vadd.f32 %v2473_v10, %v3277_v48  ;;  %v1685_v13 = vpop.f32.mrb[83].mxu1  ;;  %vm1763_vm4 = vcmp.gt.f32.partialorder %v1691_v7, 0.0 }
 0x378   : > { %v1793_v14 = vmul.f32 0.01, %v1683_v9  ;;  %v1686_v15 = vadd.f32 %v3277_v48, %v1685_v13  ;;  %vm1761_vm5 = vcmp.gt.f32.partialorder %v1683_v9, 0.0 }
 0x379   : > { %vm1764_vm6 = vcmp.gt.f32.partialorder %v1694_v12, 0.0  ;;  %v1796_v22 = vmul.f32 0.01, %v1694_v12  ;;  %v1827_v28 = vsel %vm1763_vm4, %v1691_v7, %v1795_v11 }
 0x37a   : > { %vm1762_vm7 = vcmp.gt.f32.partialorder %v1686_v15, 0.0  ;;  %v1794_v27 = vmul.f32 0.01, %v1686_v15  ;;  %v1825_v30 = vsel %vm1761_vm5, %v1683_v9, %v1793_v14 }
 0x37b   : > { %v1828_v29 = vsel %vm1764_vm6, %v1694_v12, %v1796_v22 }
 0x37c   : > { %v2492_v31 = vpack.c.bf16 %v1828_v29, %v1827_v28  ;;  %v1826_v32 = vsel %vm1762_vm7, %v1686_v15, %v1794_v27 }
 0x37d   : > { %v2486_v34 = vpack.c.bf16 %v1826_v32, %v1825_v30 }
 0x37f   : > { %2488 = vmatprep.subr.msk.bf16.mxu0 %vm3356_vm8, %v2486_v34 }
 0x380   : > { %2491 = vmatpush3.bf16.xpose.msk.msra.mxu0 %vm3356_vm8, %v2489_v2 }
 0x381   : > { %2494 = vmatprep.subr.msk.bf16.mxu0 %vm3356_vm8, %v2492_v31 }
 0x384   : > { %v2476_v35 = vpop.f32.mrb[84].mxu1 }
 0x385   : > { %v1707_v36 = vadd.f32 %v2476_v35, %v3277_v48  ;;  %v1698_v37 = vpop.f32.mrb[85].mxu1 }
 0x386   : > { %v1699_v38 = vadd.f32 %v3277_v48, %v1698_v37  ;;  %v2477_v45 = vpop.f32.mrb[86].mxu1 }
 0x387   : > { %v1799_v46 = vmul.f32 0.01, %v1707_v36  ;;  %v1710_v47 = vadd.f32 %v2477_v45, %v3277_v48  ;;  %v1701_v49 = vpop.f32.mrb[87].mxu1  ;;  %vm1767_vm9 = vcmp.gt.f32.partialorder %v1707_v36, 0.0 }
 0x388   : > { %v1797_v50 = vmul.f32 0.01, %v1699_v38  ;;  %v1702_v63 = vadd.f32 %v3277_v48, %v1701_v49  ;;  %2497 = vmatpush3.bf16.xpose.msk.msra.mxu0 %vm3356_vm8, %v2495_v0  ;;  %vm1765_vm10 = vcmp.gt.f32.partialorder %v1699_v38, 0.0 }
 0x389   : > { %vm1768_vm11 = vcmp.gt.f32.partialorder %v1710_v47, 0.0  ;;  %v1800_v1 = vmul.f32 0.01, %v1710_v47  ;;  %v1831_v51 = vsel %vm1767_vm9, %v1707_v36, %v1799_v46 }
 0x38a   : > { %vm1766_vm12 = vcmp.gt.f32.partialorder %v1702_v63, 0.0  ;;  %v1798_v2 = vmul.f32 0.01, %v1702_v63  ;;  %v1829_v16 = vsel %vm1765_vm10, %v1699_v38, %v1797_v50 }
 0x38b   : > { %v1832_v52 = vsel %vm1768_vm11, %v1710_v47, %v1800_v1 }
 0x38c   : > { %v2504_v53 = vpack.c.bf16 %v1832_v52, %v1831_v51  ;;  %v1830_v54 = vsel %vm1766_vm12, %v1702_v63, %v1798_v2 }
 0x38d   : > { %v2498_v55 = vpack.c.bf16 %v1830_v54, %v1829_v16 }
 0x38f   : > { %2500 = vmatprep.subr.msk.bf16.mxu0 %vm3356_vm8, %v2498_v55 }
 0x390   : > { %2503 = vmatpush3.bf16.xpose.msk.msra.mxu0 %vm3356_vm8, %v2501_v26 }
 0x391   : > { %2506 = vmatprep.subr.msk.bf16.mxu0 %vm3356_vm8, %v2504_v53 }
 0x394   : > { %v2480_v61 = vpop.f32.mrb[88].mxu1 }
 0x395   : > { %v1723_v62 = vadd.f32 %v2480_v61, %v3277_v48  ;;  %v1714_v0 = vpop.f32.mrb[89].mxu1 }
 0x396   : > { %v1715_v56 = vadd.f32 %v3277_v48, %v1714_v0  ;;  %v2481_v6 = vpop.f32.mrb[90].mxu1 }
 0x397   : > { %v1803_v7 = vmul.f32 0.01, %v1723_v62  ;;  %v1726_v8 = vadd.f32 %v2481_v6, %v3277_v48  ;;  %v1717_v9 = vpop.f32.mrb[91].mxu1  ;;  %vm1771_vm13 = vcmp.gt.f32.partialorder %v1723_v62, 0.0 }
 0x398   : > { %v1801_v10 = vmul.f32 0.01, %v1715_v56  ;;  %v1718_v21 = vadd.f32 %v3277_v48, %v1717_v9  ;;  %2509 = vmatpush3.bf16.xpose.msk.msra.mxu0 %vm3356_vm8, %v2507_v24  ;;  %vm1769_vm14 = vcmp.gt.f32.partialorder %v1715_v56, 0.0 }
 0x399   : > { %vm1772_vm15 = vcmp.gt.f32.partialorder %v1726_v8, 0.0  ;;  %v1804_v25 = vmul.f32 0.01, %v1726_v8  ;;  %v1835_v11 = vsel %vm1771_vm13, %v1723_v62, %v1803_v7 }
 0x39a   : > { %vm1770_vm0 = vcmp.gt.f32.partialorder %v1718_v21, 0.0  ;;  %v1802_v26 = vmul.f32 0.01, %v1718_v21  ;;  %v1833_v13 = vsel %vm1769_vm14, %v1715_v56, %v1801_v10 }
 0x39b   : > { %v1836_v12 = vsel %vm1772_vm15, %v1726_v8, %v1804_v25 }
 0x39c   : > { %v2516_v14 = vpack.c.bf16 %v1836_v12, %v1835_v11  ;;  %v1834_v15 = vsel %vm1770_vm0, %v1718_v21, %v1802_v26 }
 0x39d   : > { %v2510_v22 = vpack.c.bf16 %v1834_v15, %v1833_v13 }
 0x39f   : > { %2512 = vmatprep.subr.msk.bf16.mxu0 %vm3356_vm8, %v2510_v22 }
 0x3a0   : > { %2515 = vmatpush3.bf16.xpose.msk.msra.mxu0 %vm3356_vm8, %v2513_v44 }
 0x3a1   : > { %2518 = vmatprep.subr.msk.bf16.mxu0 %vm3356_vm8, %v2516_v14 }
 0x3a4   : > { %v2484_v23 = vpop.f32.mrb[92].mxu1 }
 0x3a5   : > { %v1739_v20 = vadd.f32 %v2484_v23, %v3277_v48  ;;  %v1730_v24 = vpop.f32.mrb[93].mxu1 }
 0x3a6   : > { %v1731_v27 = vadd.f32 %v3277_v48, %v1730_v24  ;;  %v2485_v28 = vpop.f32.mrb[94].mxu1 }
 0x3a7   : > { %v1807_v29 = vmul.f32 0.01, %v1739_v20  ;;  %v1742_v30 = vadd.f32 %v2485_v28, %v3277_v48  ;;  %v1733_v31 = vpop.f32.mrb[95].mxu1  ;;  %vm1775_vm1 = vcmp.gt.f32.partialorder %v1739_v20, 0.0 }
 0x3a8   : > { %v1805_v32 = vmul.f32 0.01, %v1731_v27  ;;  %v1734_v41 = vadd.f32 %v3277_v48, %v1733_v31  ;;  %2521 = vmatpush3.bf16.xpose.msk.msra.mxu0 %vm3356_vm8, %v2519_v42  ;;  %vm1773_vm3 = vcmp.gt.f32.partialorder %v1731_v27, 0.0  ;;  %v2017_v48 = vpop.permute.xlu0 %2016 }
 0x3a9   : > { %vm1776_vm4 = vcmp.gt.f32.partialorder %v1742_v30, 0.0  ;;  %v1808_v43 = vmul.f32 0.01, %v1742_v30  ;;  %v1839_v34 = vsel %vm1775_vm1, %v1739_v20, %v1807_v29  ;;  %v2022_v39 = vrot.slane %v2017_v48, %v503_v19 }
 0x3aa   : > { %vm1774_vm5 = vcmp.gt.f32.partialorder %v1734_v41, 0.0  ;;  %v1806_v44 = vmul.f32 0.01, %v1734_v41  ;;  %v1837_v36 = vsel %vm1773_vm3, %v1731_v27, %v1805_v32 }
 0x3ab   : > { %v1840_v35 = vsel %vm1776_vm4, %v1742_v30, %v1808_v43 }
 0x3ac   : > { %v2528_v37 = vpack.c.bf16 %v1840_v35, %v1839_v34  ;;  %v1838_v38 = vsel %vm1774_vm5, %v1734_v41, %v1806_v44 }
 0x3ad   : > { %v2522_v45 = vpack.c.bf16 %v1838_v38, %v1837_v36 }
 0x3af   : > { %2524 = vmatprep.subr.msk.bf16.mxu0 %vm3356_vm8, %v2522_v45 }
 0x3b0   : > { %2527 = vmatpush3.bf16.xpose.msk.msra.mxu0 %vm3356_vm8, %v2525_v5 }
 0x3b1   : > { %2530 = vmatprep.subr.msk.bf16.mxu0 %vm3356_vm8, %v2528_v37 }
 0x3b8   : > { %2533 = vmatpush3.bf16.xpose.msk.msra.mxu0 %vm3356_vm8, %v2531_v3 }
 0x3bf   : > { %2445 = vmatmul.mubr.msk.f32.vlgmr.msra.gmra.mrb[64].mxu0 %vm1842_vm2, %v3286_v58  ;;  %v2811_v58 = vmov 1966171168   ;;  %vm2057_vm2 = vcmp.lt.s32.totalorder %v501_v17, 256 }
 0x3c0   : > { %v2041_v47 = vunpack.c.l.s4 %v2811_v58 }
 0x3c2   : > { %v2042_v19 = vunpack.c.0.s8 %v2041_v47 }
 0x3c4   : > { %v2045_v50 = vsub.s32 %v2042_v19, %v3132_v18 }
 0x492   : > { %v2008_v40 = vpop.f32.mrb[64].mxu0 }
 0x493   : > { %v2023_v42 = vadd.f32 %v2022_v39, %v2008_v40  ;;  %v2010_v60 = vpop.f32.mrb[65].mxu0 }
 0x494   : > { %v2024_v4 = vadd.f32 %v2022_v39, %v2010_v60 }
 0x495   : > { %v2270_v5 = vmul.f32 -1.442695, %v2023_v42 }
 0x496   : > { %v2271_v46 = vmul.f32 -1.442695, %v2024_v4 }
 0x497   : > { %2666 = vpow2.f32 %v2270_v5 }
 0x498   : > { %2668 = vpow2.f32 %v2271_v46 }
 0x4a1   : > { %v2667_v57 = vpop.eup %2666 }
 0x4a2   : > { %v2669_v59 = vpop.eup %2668  ;;  %v2031_v3 = vadd.f32 1.0, %v2667_v57 }
 0x4a3   : > { %v2032_v33 = vadd.f32 1.0, %v2669_v59 }
 0x4a4   : > { %2670 = vrcp.f32 %v2031_v3 }
 0x4a5   : > { %2672 = vrcp.f32 %v2032_v33 }
 0x4ae   : > { %v2671_v49 = vpop.eup %2670 }
 0x4af   : > { %v2673_v63 = vpop.eup %2672 }
 0x4b0   : > { %v2039_v1 = vcombine.low %v2671_v49, %v2673_v63 }
 0x4b2   : > { %v2046_v2 = vrot.slane %v2039_v1, %v2045_v50 }
 0x4b4   : > { %v2053_v51 = vrot.slane %v2046_v2, %v2045_v50 }
 0x4b6   : > { %2059 = vst.msk [vmem:[%s368_s16] sm:$0x3] %vm2057_vm2, %v2053_v51 }
 0x4b7   : > { %2745 = shalt.err (!%p2742_p7)
}
 0x4b8   : > { %s2746_s15 = scalar_lea.hbm %s3439_s24, 32  ;;  %s2750_s21 = scalar_lea.hbm %s3492_s9, 64 }
 0x4b9   : > { %p2747_p9 = scmp.ne.s32.totalorder %s3439_s24, %s2746_s15  ;;  %p2751_p5 = scmp.lt.u32.totalorder %s3439_s24, %s3492_s9 }
 0x4ba   : > { %p2752_p11 = scmp.lt.u32.totalorder %s2750_s21, %s2746_s15  ;;  %p2754_p4 = scmp.lt.u32.totalorder %s2746_s15, %s3439_s24 }
 0x4bb   : > { %p2748_p2 = pnand %p2747_p9, %p2957_p12 }
 0x4bc   : > { %p2753_p1 = por %p2752_p11, %p2751_p5 }
 0x4bd   : > { %p2749_p0 = pneg %p2748_p2 }
 0x4be   : > { %p2755_p6 = por %p2754_p4, %p2753_p1 }
 0x4c0   : > { %p2756_p8 = pnand %p2755_p6, %p2749_p0 }
 0x4c2   : > { %2759 = shalt.err (!%p2756_p8)
}
 0x4c3   : > { %2540 = dma.vmem_to_hbm [thread:$0]  (%p2957_p12), %s3441_s18, 32, %s3439_s24, %s2061_s19  }
 0x4c4 PF: > { %s2087_s26 = sand.u32 1, %s2790_s11   ;;  %p3512_p10 = scmp.ne.s32.totalorder %s3499_s17, 0 }
 0x4c5   : > { %p3513_p13 = scmp.ge.s32.totalorder %s2802_s14, 2  ;;  %s2088_s23 = scalar_lea.sflag [#allocation5], %s2087_s26 }
 0x4c7   : > { %p2551_p3 = pnand %p3513_p13, %p3512_p10 }
 0x4c9   : > { %2785 = dma.done.wait (!%p2551_p3), %s2088_s23, 32  }
 0x4ca   : > { %2787 = vsyncadd (!%p2551_p3), %s2088_s23, 4294967264  ;;  %s3514_s14 = sld [smem:[#allocation12_spill]]  ;;  %s3515_s11 = smov %s2794_s12 }
 0x4cb   : > { %s3516_s12 = smov %s2798_s13  ;;  %s3517_s13 = smov %s2953_s28 }
 0x4d0   : > { %p25_p7 = scmp.ge.s32.totalorder %s3514_s14, 4  }
 0x4d2   :  { %27 = sbr.rel (!%p25_p7) target bundleno = 9 (0x9), region = 105 }
 0x4d9   :  { %2093 = vsyncpa [#allocation4], 1 }
 0x4da   :  { %2095 = vsyncpa [#allocation4 + $0x1], 1 }
 0x4db   :  { %2096 = vsyncpa [#allocation7], 1 }
 0x4dc   :  { %2097 = vsyncpa [#allocation5], 1 }
 0x4dd   :  { %2099 = vsyncpa [#allocation5 + $0x1], 1 }

</bundles_post_ra>
